<compile_context>
chip_gen: v5e
topology: v5e:2x2
jax: 0.10.0
libtpu: 0.0.40
codegen_flags: <defaults>
</compile_context>

<pallas_src>
import jax
import jax.numpy as jnp
from jax.experimental import pallas as pl
from jax.experimental.pallas import tpu as pltpu

K = 3  # conv kernel size, padding = 1

# Parity decomposition: output pixel (2*yo+py, 2*xo+px) only touches a 2x2
# footprint of the zero-padded original input.  _SETS[p][d] lists which 3x3
# kernel rows kh collapse onto footprint row-offset (p + d) for phase p
# (identical mapping for columns / kw).
_SETS = (([0], [1, 2]),   # phase 0: offset 0 <- {kh=0},   offset 1 <- {kh=1,2}
         ([0, 1], [2]))   # phase 1: offset 1 <- {kh=0,1}, offset 2 <- {kh=2}


def _fused_phase_weights(weight):
    """(3,3,Cin,Cout) HWIO conv weight -> (4, 4*Cin, Cout) fused phase weights."""
    Cin, Cout = weight.shape[2], weight.shape[3]
    phases = []
    for py in range(2):
        for px in range(2):
            taps = []
            for dr in range(2):
                for dc in range(2):
                    w_eff = jnp.zeros((Cin, Cout), weight.dtype)
                    for kh in _SETS[py][dr]:
                        for kw in _SETS[px][dc]:
                            w_eff = w_eff + weight[kh, kw]
                    taps.append(w_eff)
            phases.append(jnp.concatenate(taps, axis=0))      # (4*Cin, Cout)
    return jnp.stack(phases, axis=0)                          # (4, 4*Cin, Cout)


def _pick_row_tile(H, W, Cin, Cout, x_bytes=4, budget_bytes=10 * 1024 * 1024):
    """Largest row tile (divisor of H) whose double-buffered blocks fit budget."""
    best = 1
    for th in range(1, H + 1):
        if H % th:
            continue
        x_blk = (th + 2) * (W + 2) * Cin * x_bytes
        skip_out = 2 * (th * 2 * W * 2 * Cout * 4)   # skip + out tiles (f32)
        if 2 * (x_blk + skip_out) <= budget_bytes:   # x2 for double buffering
            best = th
    return best


def _upsample2d_kernel(x_main_ref, x_h1_ref, x_h2_ref, skip_ref, w_ref, b_ref,
                       fac_ref, o_ref):
    # x_main_ref: (1, TH,  W+2, Cin)     rows [r*TH, r*TH+TH) of zero-padded x
    # x_h*_ref:   (1, 1,   W+2, Cin)     2-row halo below the main block
    # skip_ref:   (1, TH, 2, W, 2*Cout)  phase-folded skip tile
    # w_ref:      (4, 4*Cin, Cout)       fused per-phase weights
    # b_ref:      (1, Cout)
    # fac_ref:    (1, 1)                 SMEM scalar
    # o_ref:      (1, TH, 2, W, 2*Cout)
    TH = x_main_ref.shape[1]
    Wp = x_main_ref.shape[2]
    Cin = x_main_ref.shape[3]
    W = Wp - 2
    Cout = b_ref.shape[1]

    # Assemble the (TH+2, W+2, Cin) row-haloed tile (leading-dim concat: cheap).
    x_tile = jnp.concatenate(
        [x_main_ref[0], x_h1_ref[0], x_h2_ref[0]], axis=0)

    # Hoist the 3 column-shifted views once (one sublane relayout each) instead
    # of 9 shifted whole-tile slices.
    xc = [x_tile[:, c:c + W, :] for c in range(K)]            # (TH+2, W, Cin)

    bias = b_ref[...].astype(jnp.float32)                     # (1, Cout)
    fac = fac_ref[0, 0]

    rows = []
    for py in range(2):
        phases = []
        for px in range(2):
            # im2col for this phase: 2x2 footprint -> contraction depth 4*Cin,
            # one MXU matmul per phase (4 total per tile).
            taps = [xc[px + dc][py + dr:py + dr + TH]          # (TH, W, Cin)
                    for dr in range(2) for dc in range(2)]
            patch = jnp.concatenate(taps, axis=-1).reshape(TH * W, 4 * Cin)
            acc = jnp.dot(patch, w_ref[2 * py + px],
                          preferred_element_type=jnp.float32)  # (TH*W, Cout) f32
            phases.append((acc + bias).reshape(TH, W, Cout))
        # Fold the px phase into the channel (lane) dim -> (TH, W, 2*Cout).
        rows.append(jnp.concatenate(phases, axis=-1))
    # Fold the py phase into a leading dim -> (TH, 2, W, 2*Cout).
    h = jnp.stack(rows, axis=1)

    skip = skip_ref[0].astype(jnp.float32)
    # torch.lerp(skip, h, fac)
    o_ref[0] = (skip + fac * (h - skip)).astype(o_ref.dtype)


def upsample2d_forward_nhwc(x, skip, weight, bias, fac, *,
                            compute_dtype=jnp.float32, row_tile=None,
                            vmem_limit_bytes=48 * 1024 * 1024):
    """NHWC forward (no layout transposes).

    x:      (B, H, W, Cin)            skip: (B, 2H, 2W, Cout)
    weight: (3, 3, Cin, Cout) (HWIO)  bias: (Cout,)   fac: scalar / (1,)
    returns (B, 2H, 2W, Cout) float32
    """
    B, H, W, Cin = x.shape
    Bs, H2, W2, Cout = skip.shape
    assert Bs == B and H2 == 2 * H and W2 == 2 * W
    assert weight.shape == (K, K, Cin, Cout)

    # Zero-pad the ORIGINAL input by 1 (cheap; the 4x nearest-upsampled image
    # is never materialized -- the kernel uses the parity decomposition).
    xpad = jnp.pad(x.astype(compute_dtype), ((0, 0), (1, 1), (1, 1), (0, 0)))
    Wp = W + 2

    wph = _fused_phase_weights(weight.astype(compute_dtype))   # (4, 4*Cin, Cout)
    b2d = bias.reshape(1, Cout).astype(jnp.float32)
    fac2d = jnp.asarray(fac, jnp.float32).reshape(1, 1)

    # Free row-major reshape: (B, 2H, 2W, Cout) == (B, H, 2, W, 2*Cout).
    skip5 = skip.reshape(B, H, 2, W, 2 * Cout)

    if row_tile is None:
        row_tile = _pick_row_tile(H, W, Cin, Cout,
                                  x_bytes=jnp.dtype(compute_dtype).itemsize)
    assert H % row_tile == 0
    TH = row_tile
    n_row_tiles = H // TH

    out5 = pl.pallas_call(
        _upsample2d_kernel,
        out_shape=jax.ShapeDtypeStruct((B, H, 2, W, 2 * Cout), jnp.float32),
        grid=(B, n_row_tiles),
        in_specs=[
            # Main TH-row block of padded x, plus a 2-row halo (two 1-row blocks
            # on the same array -> everything stays auto-pipelined).
            pl.BlockSpec((1, TH, Wp, Cin), lambda b, r: (b, r, 0, 0)),
            pl.BlockSpec((1, 1, Wp, Cin), lambda b, r: (b, r * TH + TH, 0, 0)),
            pl.BlockSpec((1, 1, Wp, Cin), lambda b, r: (b, r * TH + TH + 1, 0, 0)),
            pl.BlockSpec((1, TH, 2, W, 2 * Cout), lambda b, r: (b, r, 0, 0, 0)),
            pl.BlockSpec((4, 4 * Cin, Cout), lambda b, r: (0, 0, 0)),
            pl.BlockSpec((1, Cout), lambda b, r: (0, 0)),
            pl.BlockSpec(memory_space=pltpu.MemorySpace.SMEM),   # fac scalar
        ],
        out_specs=pl.BlockSpec((1, TH, 2, W, 2 * Cout),
                               lambda b, r: (b, r, 0, 0, 0)),
        compiler_params=pltpu.CompilerParams(
            dimension_semantics=("parallel", "parallel"),
            vmem_limit_bytes=vmem_limit_bytes),
    )(xpad, xpad, xpad, skip5, wph, b2d, fac2d)

    # Free reshape back to NHWC.
    return out5.reshape(B, H2, W2, Cout)


def upsample2d_forward(hidden_states_nchw, skip_nchw, weight, bias, fac, **kw):
    """NCHW compatibility wrapper (PyTorch layout).  The transposes here are
    optional glue; prefer `upsample2d_forward_nhwc` end-to-end."""
    x = jnp.transpose(hidden_states_nchw, (0, 2, 3, 1))
    skip = jnp.transpose(skip_nchw, (0, 2, 3, 1))
    out = upsample2d_forward_nhwc(x, skip, weight, bias, fac, **kw)
    return jnp.transpose(out, (0, 3, 1, 2))


# TODO(synk): the non-default upsample_method='pixel_shuffle' branch of the
# module (Conv to 4*Cout followed by pixel_shuffle) is not implemented here.


def _reference_forward_nchw(x, skip, weight, bias, fac):
    """Pure-JAX reference (lax conv) for correctness checking."""
    up = jnp.repeat(jnp.repeat(x, 2, axis=2), 2, axis=3)
    conv = jax.lax.conv_general_dilated(
        up, weight, window_strides=(1, 1), padding="SAME",
        dimension_numbers=("NCHW", "HWIO", "NCHW"),
    ) + bias.reshape(1, -1, 1, 1)
    f = jnp.asarray(fac, jnp.float32)
    return skip + f * (conv - skip)


if __name__ == "__main__":
    key = jax.random.PRNGKey(0)
    k1, k2, k3, k4 = jax.random.split(key, 4)

    B, Cin, Cout, H, W = 2, 4, 4, 16, 16

    hidden_states = jax.random.normal(k1, (B, Cin, H, W), dtype=jnp.float32)
    skip = jax.random.normal(k2, (B, Cout, 2 * H, 2 * W), dtype=jnp.float32)

    # Conv2d(Cin, Cout, 3, padding=1, bias=True)-style deterministic init.
    fan_in = Cin * K * K
    bound = 1.0 / (fan_in ** 0.5)
    weight = jax.random.uniform(k3, (K, K, Cin, Cout), jnp.float32, -bound, bound)
    bias = jax.random.uniform(k4, (Cout,), jnp.float32, -bound, bound)
    fac = jnp.float32(0.5)   # nn.Parameter(torch.ones(1) * 0.5)

    ref = _reference_forward_nchw(hidden_states, skip, weight, bias, fac)

    # Exercise the row-tiled + halo path explicitly (2 row tiles per batch).
    out_tiled = upsample2d_forward(hidden_states, skip, weight, bias, fac,
                                   row_tile=8)
    jax.block_until_ready(out_tiled)
    assert out_tiled.shape == (B, Cout, 2 * H, 2 * W)
    assert jnp.allclose(out_tiled, ref, atol=1e-4, rtol=1e-4)

    # Default auto-chosen row tile.
    out_auto = upsample2d_forward(hidden_states, skip, weight, bias, fac)
    jax.block_until_ready(out_auto)
    assert jnp.allclose(out_auto, ref, atol=1e-4, rtol=1e-4)

    print("KERNEL_OK")
</pallas_src>

<mosaic_0001>
module attributes {stable_mosaic.version = 11 : i64} {
  func.func @_upsample2d_kernel(%arg0: i32, %arg1: i32, %arg2: memref<1x8x18x4xf32, #tpu.memory_space<vmem>>, %arg3: memref<1x1x18x4xf32, #tpu.memory_space<vmem>>, %arg4: memref<1x1x18x4xf32, #tpu.memory_space<vmem>>, %arg5: memref<1x8x2x16x8xf32, #tpu.memory_space<vmem>>, %arg6: memref<4x16x4xf32, #tpu.memory_space<vmem>>, %arg7: memref<1x4xf32, #tpu.memory_space<vmem>>, %arg8: memref<1x1xf32, #tpu.memory_space<smem>>, %arg9: memref<1x8x2x16x8xf32, #tpu.memory_space<vmem>>) attributes {dimension_semantics = [#tpu.dimension_semantics<parallel>, #tpu.dimension_semantics<parallel>], iteration_bounds = array<i64: 2, 2>, scalar_prefetch = 0 : i64, scratch_operands = 0 : i64, tpu.core_type = #tpu.core_type<tc>, window_params = [{transform_indices = @transform_0, window_bounds = array<i64: 1, 8, 18, 4>}, {transform_indices = @transform_1, window_bounds = array<i64: 1, 1, 18, 4>}, {transform_indices = @transform_2, window_bounds = array<i64: 1, 1, 18, 4>}, {transform_indices = @transform_3, window_bounds = array<i64: 1, 8, 2, 16, 8>}, {pipeline_mode = #tpu.pipeline_mode<synchronous>, transform_indices = @transform_4, window_bounds = array<i64: 4, 16, 4>}, {pipeline_mode = #tpu.pipeline_mode<synchronous>, transform_indices = @transform_5, window_bounds = array<i64: 1, 4>}, {transform_indices = @transform_6, window_bounds = array<i64: 1, 1>}, {transform_indices = @transform_7, window_bounds = array<i64: 1, 8, 2, 16, 8>}]} {
    %c0 = arith.constant 0 : index
    %c0_0 = arith.constant 0 : index
    %c0_1 = arith.constant 0 : index
    %c0_2 = arith.constant 0 : index
    %0 = vector.load %arg2[%c0, %c0_0, %c0_1, %c0_2] : memref<1x8x18x4xf32, #tpu.memory_space<vmem>>, vector<1x8x18x4xf32>
    %1 = vector.shape_cast %0 : vector<1x8x18x4xf32> to vector<8x18x4xf32>
    %c0_3 = arith.constant 0 : index
    %c0_4 = arith.constant 0 : index
    %c0_5 = arith.constant 0 : index
    %c0_6 = arith.constant 0 : index
    %2 = vector.load %arg3[%c0_3, %c0_4, %c0_5, %c0_6] : memref<1x1x18x4xf32, #tpu.memory_space<vmem>>, vector<1x1x18x4xf32>
    %3 = vector.shape_cast %2 : vector<1x1x18x4xf32> to vector<1x18x4xf32>
    %c0_7 = arith.constant 0 : index
    %c0_8 = arith.constant 0 : index
    %c0_9 = arith.constant 0 : index
    %c0_10 = arith.constant 0 : index
    %4 = vector.load %arg4[%c0_7, %c0_8, %c0_9, %c0_10] : memref<1x1x18x4xf32, #tpu.memory_space<vmem>>, vector<1x1x18x4xf32>
    %5 = vector.shape_cast %4 : vector<1x1x18x4xf32> to vector<1x18x4xf32>
    %6 = tpu.concatenate %1, %3, %5 in 0 : vector<8x18x4xf32>, vector<1x18x4xf32>, vector<1x18x4xf32> -> vector<10x18x4xf32>
    %7 = vector.extract_strided_slice %6 {offsets = [0, 0, 0], sizes = [10, 16, 4], strides = [1, 1, 1]} : vector<10x18x4xf32> to vector<10x16x4xf32>
    %8 = vector.extract_strided_slice %6 {offsets = [0, 1, 0], sizes = [10, 16, 4], strides = [1, 1, 1]} : vector<10x18x4xf32> to vector<10x16x4xf32>
    %9 = vector.extract_strided_slice %6 {offsets = [0, 2, 0], sizes = [10, 16, 4], strides = [1, 1, 1]} : vector<10x18x4xf32> to vector<10x16x4xf32>
    %c0_11 = arith.constant 0 : index
    %c0_12 = arith.constant 0 : index
    %10 = vector.load %arg7[%c0_11, %c0_12] : memref<1x4xf32, #tpu.memory_space<vmem>>, vector<1x4xf32>
    %c0_13 = arith.constant 0 : index
    %c0_14 = arith.constant 0 : index
    %11 = memref.load %arg8[%c0_13, %c0_14] : memref<1x1xf32, #tpu.memory_space<smem>>
    %12 = vector.extract_strided_slice %7 {offsets = [0, 0, 0], sizes = [8, 16, 4], strides = [1, 1, 1]} : vector<10x16x4xf32> to vector<8x16x4xf32>
    %13 = vector.extract_strided_slice %8 {offsets = [0, 0, 0], sizes = [8, 16, 4], strides = [1, 1, 1]} : vector<10x16x4xf32> to vector<8x16x4xf32>
    %14 = vector.extract_strided_slice %7 {offsets = [1, 0, 0], sizes = [8, 16, 4], strides = [1, 1, 1]} : vector<10x16x4xf32> to vector<8x16x4xf32>
    %15 = vector.extract_strided_slice %8 {offsets = [1, 0, 0], sizes = [8, 16, 4], strides = [1, 1, 1]} : vector<10x16x4xf32> to vector<8x16x4xf32>
    %16 = tpu.concatenate %12, %13, %14, %15 in 2 : vector<8x16x4xf32>, vector<8x16x4xf32>, vector<8x16x4xf32>, vector<8x16x4xf32> -> vector<8x16x16xf32>
    %17 = vector.shape_cast %16 : vector<8x16x16xf32> to vector<128x16xf32>
    %c0_15 = arith.constant 0 : index
    %c0_16 = arith.constant 0 : index
    %c0_17 = arith.constant 0 : index
    %18 = vector.load %arg6[%c0_15, %c0_16, %c0_17] : memref<4x16x4xf32, #tpu.memory_space<vmem>>, vector<1x16x4xf32>
    %19 = vector.shape_cast %18 : vector<1x16x4xf32> to vector<16x4xf32>
    %cst = arith.constant dense<0.000000e+00> : vector<128x4xf32>
    %20 = tpu.matmul %17, %19, %cst {dimension_numbers = #tpu.dot_dimension_numbers<[1], [0], [0], [1], [0, 0, 1, 1], [], []>} : vector<128x16xf32>, vector<16x4xf32>, vector<128x4xf32> -> vector<128x4xf32>
    %21 = vector.broadcast %10 : vector<1x4xf32> to vector<128x4xf32>
    %22 = arith.addf %20, %21 : vector<128x4xf32>
    %23 = vector.shape_cast %22 : vector<128x4xf32> to vector<8x16x4xf32>
    %24 = vector.extract_strided_slice %8 {offsets = [0, 0, 0], sizes = [8, 16, 4], strides = [1, 1, 1]} : vector<10x16x4xf32> to vector<8x16x4xf32>
    %25 = vector.extract_strided_slice %9 {offsets = [0, 0, 0], sizes = [8, 16, 4], strides = [1, 1, 1]} : vector<10x16x4xf32> to vector<8x16x4xf32>
    %26 = vector.extract_strided_slice %8 {offsets = [1, 0, 0], sizes = [8, 16, 4], strides = [1, 1, 1]} : vector<10x16x4xf32> to vector<8x16x4xf32>
    %27 = vector.extract_strided_slice %9 {offsets = [1, 0, 0], sizes = [8, 16, 4], strides = [1, 1, 1]} : vector<10x16x4xf32> to vector<8x16x4xf32>
    %28 = tpu.concatenate %24, %25, %26, %27 in 2 : vector<8x16x4xf32>, vector<8x16x4xf32>, vector<8x16x4xf32>, vector<8x16x4xf32> -> vector<8x16x16xf32>
    %29 = vector.shape_cast %28 : vector<8x16x16xf32> to vector<128x16xf32>
    %c1 = arith.constant 1 : index
    %c0_18 = arith.constant 0 : index
    %c0_19 = arith.constant 0 : index
    %30 = vector.load %arg6[%c1, %c0_18, %c0_19] : memref<4x16x4xf32, #tpu.memory_space<vmem>>, vector<1x16x4xf32>
    %31 = vector.shape_cast %30 : vector<1x16x4xf32> to vector<16x4xf32>
    %cst_20 = arith.constant dense<0.000000e+00> : vector<128x4xf32>
    %32 = tpu.matmul %29, %31, %cst_20 {dimension_numbers = #tpu.dot_dimension_numbers<[1], [0], [0], [1], [0, 0, 1, 1], [], []>} : vector<128x16xf32>, vector<16x4xf32>, vector<128x4xf32> -> vector<128x4xf32>
    %33 = vector.broadcast %10 : vector<1x4xf32> to vector<128x4xf32>
    %34 = arith.addf %32, %33 : vector<128x4xf32>
    %35 = vector.shape_cast %34 : vector<128x4xf32> to vector<8x16x4xf32>
    %36 = tpu.concatenate %23, %35 in 2 : vector<8x16x4xf32>, vector<8x16x4xf32> -> vector<8x16x8xf32>
    %37 = vector.extract_strided_slice %7 {offsets = [1, 0, 0], sizes = [8, 16, 4], strides = [1, 1, 1]} : vector<10x16x4xf32> to vector<8x16x4xf32>
    %38 = vector.extract_strided_slice %8 {offsets = [1, 0, 0], sizes = [8, 16, 4], strides = [1, 1, 1]} : vector<10x16x4xf32> to vector<8x16x4xf32>
    %39 = vector.extract_strided_slice %7 {offsets = [2, 0, 0], sizes = [8, 16, 4], strides = [1, 1, 1]} : vector<10x16x4xf32> to vector<8x16x4xf32>
    %40 = vector.extract_strided_slice %8 {offsets = [2, 0, 0], sizes = [8, 16, 4], strides = [1, 1, 1]} : vector<10x16x4xf32> to vector<8x16x4xf32>
    %41 = tpu.concatenate %37, %38, %39, %40 in 2 : vector<8x16x4xf32>, vector<8x16x4xf32>, vector<8x16x4xf32>, vector<8x16x4xf32> -> vector<8x16x16xf32>
    %42 = vector.shape_cast %41 : vector<8x16x16xf32> to vector<128x16xf32>
    %c2 = arith.constant 2 : index
    %c0_21 = arith.constant 0 : index
    %c0_22 = arith.constant 0 : index
    %43 = vector.load %arg6[%c2, %c0_21, %c0_22] : memref<4x16x4xf32, #tpu.memory_space<vmem>>, vector<1x16x4xf32>
    %44 = vector.shape_cast %43 : vector<1x16x4xf32> to vector<16x4xf32>
    %cst_23 = arith.constant dense<0.000000e+00> : vector<128x4xf32>
    %45 = tpu.matmul %42, %44, %cst_23 {dimension_numbers = #tpu.dot_dimension_numbers<[1], [0], [0], [1], [0, 0, 1, 1], [], []>} : vector<128x16xf32>, vector<16x4xf32>, vector<128x4xf32> -> vector<128x4xf32>
    %46 = vector.broadcast %10 : vector<1x4xf32> to vector<128x4xf32>
    %47 = arith.addf %45, %46 : vector<128x4xf32>
    %48 = vector.shape_cast %47 : vector<128x4xf32> to vector<8x16x4xf32>
    %49 = vector.extract_strided_slice %8 {offsets = [1, 0, 0], sizes = [8, 16, 4], strides = [1, 1, 1]} : vector<10x16x4xf32> to vector<8x16x4xf32>
    %50 = vector.extract_strided_slice %9 {offsets = [1, 0, 0], sizes = [8, 16, 4], strides = [1, 1, 1]} : vector<10x16x4xf32> to vector<8x16x4xf32>
    %51 = vector.extract_strided_slice %8 {offsets = [2, 0, 0], sizes = [8, 16, 4], strides = [1, 1, 1]} : vector<10x16x4xf32> to vector<8x16x4xf32>
    %52 = vector.extract_strided_slice %9 {offsets = [2, 0, 0], sizes = [8, 16, 4], strides = [1, 1, 1]} : vector<10x16x4xf32> to vector<8x16x4xf32>
    %53 = tpu.concatenate %49, %50, %51, %52 in 2 : vector<8x16x4xf32>, vector<8x16x4xf32>, vector<8x16x4xf32>, vector<8x16x4xf32> -> vector<8x16x16xf32>
    %54 = vector.shape_cast %53 : vector<8x16x16xf32> to vector<128x16xf32>
    %c3 = arith.constant 3 : index
    %c0_24 = arith.constant 0 : index
    %c0_25 = arith.constant 0 : index
    %55 = vector.load %arg6[%c3, %c0_24, %c0_25] : memref<4x16x4xf32, #tpu.memory_space<vmem>>, vector<1x16x4xf32>
    %56 = vector.shape_cast %55 : vector<1x16x4xf32> to vector<16x4xf32>
    %cst_26 = arith.constant dense<0.000000e+00> : vector<128x4xf32>
    %57 = tpu.matmul %54, %56, %cst_26 {dimension_numbers = #tpu.dot_dimension_numbers<[1], [0], [0], [1], [0, 0, 1, 1], [], []>} : vector<128x16xf32>, vector<16x4xf32>, vector<128x4xf32> -> vector<128x4xf32>
    %58 = vector.broadcast %10 : vector<1x4xf32> to vector<128x4xf32>
    %59 = arith.addf %57, %58 : vector<128x4xf32>
    %60 = vector.shape_cast %59 : vector<128x4xf32> to vector<8x16x4xf32>
    %61 = tpu.concatenate %48, %60 in 2 : vector<8x16x4xf32>, vector<8x16x4xf32> -> vector<8x16x8xf32>
    %62 = vector.shape_cast %36 : vector<8x16x8xf32> to vector<8x1x16x8xf32>
    %63 = vector.shape_cast %61 : vector<8x16x8xf32> to vector<8x1x16x8xf32>
    %64 = tpu.concatenate %62, %63 in 1 : vector<8x1x16x8xf32>, vector<8x1x16x8xf32> -> vector<8x2x16x8xf32>
    %c0_27 = arith.constant 0 : index
    %c0_28 = arith.constant 0 : index
    %c0_29 = arith.constant 0 : index
    %c0_30 = arith.constant 0 : index
    %c0_31 = arith.constant 0 : index
    %65 = vector.load %arg5[%c0_27, %c0_28, %c0_29, %c0_30, %c0_31] : memref<1x8x2x16x8xf32, #tpu.memory_space<vmem>>, vector<1x8x2x16x8xf32>
    %66 = vector.shape_cast %65 : vector<1x8x2x16x8xf32> to vector<8x2x16x8xf32>
    %67 = arith.subf %64, %66 : vector<8x2x16x8xf32>
    %68 = vector.broadcast %11 : f32 to vector<8x2x16x8xf32>
    %69 = arith.mulf %68, %67 : vector<8x2x16x8xf32>
    %70 = arith.addf %66, %69 : vector<8x2x16x8xf32>
    %c0_32 = arith.constant 0 : index
    %c0_33 = arith.constant 0 : index
    %c0_34 = arith.constant 0 : index
    %c0_35 = arith.constant 0 : index
    %c0_36 = arith.constant 0 : index
    %71 = vector.load %arg9[%c0_32, %c0_33, %c0_34, %c0_35, %c0_36] : memref<1x8x2x16x8xf32, #tpu.memory_space<vmem>>, vector<1x8x2x16x8xf32>
    %72 = vector.shape_cast %71 : vector<1x8x2x16x8xf32> to vector<8x2x16x8xf32>
    %73 = vector.shape_cast %70 : vector<8x2x16x8xf32> to vector<1x8x2x16x8xf32>
    tpu.vector_store %arg9[%c0_32, %c0_33, %c0_34, %c0_35, %c0_36], %73 {strides = array<i32>} : memref<1x8x2x16x8xf32, #tpu.memory_space<vmem>>, vector<1x8x2x16x8xf32>,
    return
  }
  func.func @transform_0(%arg0: i32, %arg1: i32) -> (i32, i32, i32, i32) {
    %c0_i32 = arith.constant 0 : i32
    %c0_i32_0 = arith.constant 0 : i32
    %c0_i32_1 = arith.constant 0 : i32
    return %arg0, %arg1, %c0_i32, %c0_i32_0 : i32, i32, i32, i32
  }
  func.func @transform_1(%arg0: i32, %arg1: i32) -> (i32, i32, i32, i32) {
    %c8_i32 = arith.constant 8 : i32
    %0 = arith.muli %arg1, %c8_i32 : i32
    %c8_i32_0 = arith.constant 8 : i32
    %1 = arith.addi %0, %c8_i32_0 : i32
    %c0_i32 = arith.constant 0 : i32
    %c0_i32_1 = arith.constant 0 : i32
    %c0_i32_2 = arith.constant 0 : i32
    return %arg0, %1, %c0_i32, %c0_i32_1 : i32, i32, i32, i32
  }
  func.func @transform_2(%arg0: i32, %arg1: i32) -> (i32, i32, i32, i32) {
    %c8_i32 = arith.constant 8 : i32
    %0 = arith.muli %arg1, %c8_i32 : i32
    %c8_i32_0 = arith.constant 8 : i32
    %1 = arith.addi %0, %c8_i32_0 : i32
    %c1_i32 = arith.constant 1 : i32
    %2 = arith.addi %1, %c1_i32 : i32
    %c0_i32 = arith.constant 0 : i32
    %c0_i32_1 = arith.constant 0 : i32
    %c0_i32_2 = arith.constant 0 : i32
    return %arg0, %2, %c0_i32, %c0_i32_1 : i32, i32, i32, i32
  }
  func.func @transform_3(%arg0: i32, %arg1: i32) -> (i32, i32, i32, i32, i32) {
    %c0_i32 = arith.constant 0 : i32
    %c0_i32_0 = arith.constant 0 : i32
    %c0_i32_1 = arith.constant 0 : i32
    %c0_i32_2 = arith.constant 0 : i32
    return %arg0, %arg1, %c0_i32, %c0_i32_0, %c0_i32_1 : i32, i32, i32, i32, i32
  }
  func.func @transform_4(%arg0: i32, %arg1: i32) -> (i32, i32, i32) {
    %c0_i32 = arith.constant 0 : i32
    %c0_i32_0 = arith.constant 0 : i32
    %c0_i32_1 = arith.constant 0 : i32
    %c0_i32_2 = arith.constant 0 : i32
    return %c0_i32, %c0_i32_0, %c0_i32_1 : i32, i32, i32
  }
  func.func @transform_5(%arg0: i32, %arg1: i32) -> (i32, i32) {
    %c0_i32 = arith.constant 0 : i32
    %c0_i32_0 = arith.constant 0 : i32
    %c0_i32_1 = arith.constant 0 : i32
    return %c0_i32, %c0_i32_0 : i32, i32
  }
  func.func @transform_6(%arg0: i32, %arg1: i32) -> (i32, i32) {
    %c0_i32 = arith.constant 0 : i32
    %c0_i32_0 = arith.constant 0 : i32
    %c0_i32_1 = arith.constant 0 : i32
    return %c0_i32, %c0_i32_0 : i32, i32
  }
  func.func @transform_7(%arg0: i32, %arg1: i32) -> (i32, i32, i32, i32, i32) {
    %c0_i32 = arith.constant 0 : i32
    %c0_i32_0 = arith.constant 0 : i32
    %c0_i32_1 = arith.constant 0 : i32
    %c0_i32_2 = arith.constant 0 : i32
    return %arg0, %arg1, %c0_i32, %c0_i32_0, %c0_i32_1 : i32, i32, i32, i32, i32
  }
}

</mosaic_0001>

<bundles_post_ra>
// kernel: tpu_custom_call.1
= control target key start
LH: loop header
LB: loop body
LE: loop exit
PB: predicated region body
PF: predicated region fallthrough
CT: control target
= control target key end

     0   :  { %s2055_s26 = smov 0   ;;  %s2057_s27 = smov 0   ;;  %s2895_s0 = inlined_call_operand.vmem [shape: f32[2,18,18,4], index: 0, kind: input, shape index: {}]   ;;  %s2896_s1 = inlined_call_operand.vmem [shape: f32[2,18,18,4], index: 1, kind: input, shape index: {}]   ;;  %s2897_s2 = inlined_call_operand.vmem [shape: f32[2,18,18,4], index: 2, kind: input, shape index: {}]   ;;  %s2898_s3 = inlined_call_operand.vmem [shape: f32[2,16,2,16,8], index: 3, kind: input, shape index: {}]   ;;  %s2899_s4 = inlined_call_operand.vmem [shape: f32[4,16,4], index: 4, kind: input, shape index: {}]   ;;  %s2900_s5 = inlined_call_operand.vmem [shape: f32[1,4], index: 5, kind: input, shape index: {}]   ;;  %s2901_s6 = inlined_call_operand.<no memory space> [shape: f32[1,1], index: 6, kind: input, shape index: {}]   ;;  %s2902_s7 = inlined_call_operand.vmem [shape: f32[2,16,2,16,8], index: 7, kind: output, shape index: {}]  }
   0x1   :  { %12 = sst [smem:[#allocation2]] %s2901_s6  ;;  %s2059_s28 = smov 0  }
   0x2   :  { %s2061_s29 = smov 0   ;;  %s2063_s30 = smov 0  }
   0x3 LB: > { %s27_s6 = sadd.s32 1, %s1999_s28  ;;  %s30_s8 = sadd.s32 1, %s2003_s29  ;;  %s2007_s30 = sphi %s2063_s30, %s18_s30   ;;  %s2003_s29 = sphi %s2061_s29, %s2906_s29   ;;  %s1999_s28 = sphi %s2059_s28, %s2905_s28   ;;  %s1995_s27 = sphi %s2057_s27, %s2904_s27   ;;  %s1991_s26 = sphi %s2055_s26, %s2903_s26  }
   0x4   : > { %p28_p0 = scmp.ge.s32.totalorder %s27_s6, 2  ;;  %p1834_p1 = scmp.ge.s32.totalorder %s2007_s30, 1 }
   0x5   : > { %p336_p2 = scmp.lt.s32.totalorder %s2007_s30, 5 }
   0x6   : > { %s2908_s6 = smov (%p28_p0, %s27_s6), 0  ;;  %s2910_s8 = smov (!%p28_p0, %s30_s8), %s2003_s29 }
   0x7   : > { %p337_p3 = pnand %p1834_p1, %p336_p2  ;;  %p32_p4 = scmp.ge.s32.totalorder %s2910_s8, 2 }
   0x8   : > { %s2085_s9 = sshll.u32 (!%p337_p3), %s1991_s26, 3  ;;  %p421_p5 = scmp.lt.s32.totalorder (!%p337_p3), %s1995_s27, 1 }
   0x9   : > { %s2912_s8 = smov (%p32_p4, %s2910_s8), 0  ;;  %340 = sbr.rel (%p337_p3) target bundleno = 612 (0x264), region = 48 }
   0xa   : > { %p423_p6 = scmp.lt.s32.totalorder (!%p337_p3), %s2085_s9, 17  ;;  %s2009_s18 = smov (!%p337_p3), 8  }
   0xb   : > { %s2010_s19 = smov (!%p337_p3), 4   ;;  %s2011_s20 = smov (!%p337_p3), 12  }
   0xc   : > { %s437_s25 = sadd.s32 (!%p337_p3), 8, %s2085_s9  ;;  %s450_s15 = sadd.s32 (!%p337_p3), 9, %s2085_s9 }
   0xd   : > { %p440_p7 = scmp.lt.s32.totalorder (!%p337_p3), %s437_s25, 17  ;;  %p453_p8 = scmp.lt.s32.totalorder (!%p337_p3), %s450_s15, 17 }
   0xe   : > { %s2914_s27 = smov (!%p421_p5, %s1995_s27), 1  ;;  %vm540_vm0 = vcmask 1046528   ;;  %v1884_v40 = vld [vmem:[%s2899_s4 + $0x28] sm:$0xff]  ;;  %v1883_v41 = vld [vmem:[%s2899_s4 + $0x20] sm:$0xff]  ;;  %v1902_v45 = vld [vmem:[%s2899_s4 + $0x38] sm:$0xff]  ;;  %vm733_vm1 = vcmask 31744  }
   0xf   : > { %s424_s10 = scalar_select %p423_p6, %s2085_s9, 17  ;;  %1282 = vmatpush.msra.mxu2 %v1884_v40  ;;  %1372 = vmatpush.msra.mxu3 %v1902_v45  ;;  %v1901_v48 = vld [vmem:[%s2899_s4 + $0x30] sm:$0xff]  ;;  %v785_v53 = vld [vmem:[%s2899_s4 + $0x8] sm:$0xff]  ;;  %v784_v54 = vld [vmem:[%s2899_s4] sm:$0xff]  ;;  %vm750_vm2 = vcmask 64512   ;;  %vm767_vm3 = vcmask 97280  }
  0x10   : > { %s2092_s11 = smul.u32 54, %s2914_s27  ;;  %852 = vmatpush.msra.mxu0 %v785_v53  ;;  %v1866_v57 = vld [vmem:[%s2899_s4 + $0x18] sm:$0xff]  ;;  %v1865_v58 = vld [vmem:[%s2899_s4 + $0x10] sm:$0xff]  ;;  %vm789_vm4 = vcmask 130048   ;;  %s2916_s25 = smov (!%p440_p7, %s437_s25), 17 }
  0x11   : > { %s1921_s12 = smul.u32 3, %s424_s10  ;;  %1283 = vmatpush.msra.mxu2 %v1883_v41  ;;  %1373 = vmatpush.msra.mxu3 %v1901_v48  ;;  %s2918_s15 = smov (!%p453_p8, %s450_s15), 17 }
  0x12   : > { %853 = vmatpush.msra.mxu0 %v784_v54  ;;  %1096 = vmatpush.msra.mxu1 %v1866_v57  ;;  %s1923_s26 = smul.u32 3, %s2916_s25  ;;  %p465_p9 = scmp.lt.s32.totalorder %s2085_s9, 15 }
  0x13   : > { %s427_s13 = sadd.s32 %s2092_s11, %s1921_s12  ;;  %s1924_s16 = smul.u32 3, %s2918_s15 }
  0x14   : > { %s1836_s14 = sshll.u32 %s427_s13, 3  ;;  %1097 = vmatpush.msra.mxu1 %v1865_v58  ;;  %s2920_s9 = smov (!%p465_p9, %s2085_s9), 15 }
  0x15   : > { %s2098_s17 = scalar_lea.vmem %s2895_s0, %s1836_s14  ;;  %s457_s21 = sadd.s32 %s1924_s16, %s2092_s11 }
  0x16   : > { %v2101_v0 = vld [vmem:[%s2098_s17 + $0x30] sm:$0xff]  ;;  %v2104_v1 = vld [vmem:[%s2098_s17 + $0x18] sm:$0xff]  ;;  %v2107_v2 = vld [vmem:[%s2098_s17 + $0x20] sm:$0xff]  ;;  %s1840_s22 = sshll.u32 %s457_s21, 3  ;;  %s1842_s25 = sshll.u32 %s2920_s9, 2 }
  0x17   : > { %635 = vrot.lane.b32.xlu1 %v2101_v0, %s2009_s18  ;;  %v551_v3 = vrot.slane %v2101_v0, 1  ;;  %v546_v4 = vrot.slane %v2104_v1, 1  ;;  %v547_v5 = vrot.slane %v2107_v2, 1  ;;  %v2115_v6 = vld [vmem:[%s2098_s17 + $0x38] sm:$0xff]  ;;  %v2119_v8 = vld [vmem:[%s2098_s17 + $0x28] sm:$0x3]  ;;  %s459_s24 = scalar_lea.vmem %s2897_s2, %s1840_s22 }
  0x18   : > { %v552_v7 = vrot.slane %v2115_v6, 1  ;;  %v2123_v10 = vld [vmem:[%s2098_s17 + $0x40] sm:$0x3]  ;;  %v549_v12 = vrot.slane %v2119_v8, 1  ;;  %v2131_v14 = vld [vmem:[%s2098_s17 + $0x8] sm:$0xff]  ;;  %v2170_v25 = vld [vmem:[%s2098_s17 + $0x50] sm:$0xff] }
  0x19   : > { %v548_v9 = vsel %vm540_vm0, %v546_v4, %v547_v5  ;;  %v554_v13 = vrot.slane %v2123_v10, 1  ;;  %v2134_v15 = vld [vmem:[%s2098_s17 + $0x10] sm:$0x3]  ;;  %v542_v17 = vrot.slane %v2131_v14, 1  ;;  %v2142_v19 = vld [vmem:[%s2098_s17] sm:$0xff]  ;;  %v2167_v24 = vld [vmem:[%s2098_s17 + $0x48] sm:$0xff] }
  0x1a   : > { %585 = vrot.lane.b32.xlu0 %v548_v9, %s2010_s19  ;;  %v553_v11 = vsel %vm540_vm0, %v551_v3, %v552_v7  ;;  %v550_v16 = vsel %vm540_vm0, %v547_v5, %v549_v12  ;;  %v544_v18 = vrot.slane %v2134_v15, 1  ;;  %v541_v21 = vrot.slane %v2142_v19, 1  ;;  %v2180_v29 = vld [vmem:[%s2098_s17 + $0x58] sm:$0x3]  ;;  %v2193_v32 = vld [vmem:[%s2098_s17 + $0x60] sm:$0xff]  ;;  %v2196_v33 = vld [vmem:[%s2098_s17 + $0x68] sm:$0xff] }
  0x1b   : > { %689 = vrot.lane.b32.xlu2 %v553_v11, %s2011_s20  ;;  %v555_v20 = vsel %vm540_vm0, %v552_v7, %v554_v13  ;;  %v556_v26 = vrot.slane %v2167_v24, 1  ;;  %v557_v27 = vrot.slane %v2170_v25, 1  ;;  %v559_v30 = vrot.slane %v2180_v29, 1  ;;  %v2206_v37 = vld [vmem:[%s2098_s17 + $0x70] sm:$0x3]  ;;  %v2225_v42 = vld [vmem:[%s2098_s17 + $0x78] sm:$0xff] }
  0x1c   : > { %v545_v22 = vsel %vm540_vm0, %v542_v17, %v544_v18  ;;  %v543_v23 = vsel %vm540_vm0, %v541_v21, %v542_v17  ;;  %v561_v34 = vrot.slane %v2193_v32, 1  ;;  %v562_v35 = vrot.slane %v2196_v33, 1  ;;  %v2228_v43 = vld [vmem:[%s2098_s17 + $0x80] sm:$0xff]  ;;  %v2244_v50 = vld [vmem:[%s2098_s17 + $0x88] sm:$0x3]  ;;  %v2271_v62 = vld [vmem:[%s2098_s17 + $0x90] sm:$0xff] }
  0x1d   : > { %v558_v28 = vsel %vm540_vm0, %v556_v26, %v557_v27  ;;  %v560_v31 = vsel %vm540_vm0, %v557_v27, %v559_v30  ;;  %v564_v38 = vrot.slane %v2206_v37, 1  ;;  %v566_v46 = vrot.slane %v2225_v42, 1  ;;  %v2274_v63 = vld [vmem:[%s2098_s17 + $0x98] sm:$0xff]  ;;  %v2332_v40 = vld [vmem:[%s2098_s17 + $0xa8] sm:$0xff]  ;;  %v2335_v41 = vld [vmem:[%s2098_s17 + $0xb0] sm:$0xff]  ;;  %s515_s12 = sld [smem:[#allocation2]] }
  0x1e   : > { %v563_v36 = vsel %vm540_vm0, %v561_v34, %v562_v35  ;;  %v567_v47 = vrot.slane %v2228_v43, 1  ;;  %v569_v52 = vrot.slane %v2244_v50, 1  ;;  %v571_v7 = vrot.slane %v2271_v62, 1  ;;  %v2353_v57 = vld [vmem:[%s2098_s17 + $0xb8] sm:$0x3] }
  0x1f   : > { %637 = vrot.lane.b32.xlu1 %v2115_v6, %s2009_s18  ;;  %v565_v39 = vsel %vm540_vm0, %v562_v35, %v564_v38  ;;  %v576_v48 = vrot.slane %v2332_v40, 1 }
  0x20   : > { %v568_v49 = vsel %vm540_vm0, %v566_v46, %v567_v47  ;;  %v570_v55 = vsel %vm540_vm0, %v567_v47, %v569_v52 }
  0x22   : > { %587 = vrot.lane.b32.xlu0 %v550_v16, %s2010_s19 }
  0x23   : > { %691 = vrot.lane.b32.xlu2 %v555_v20, %s2011_s20 }
  0x27   : > { %583 = vrot.lane.b32.xlu1 %v545_v22, %s2010_s19 }
  0x2a   : > { %581 = vrot.lane.b32.xlu0 %v543_v23, %s2010_s19 }
  0x2b   : > { %631 = vrot.lane.b32.xlu2 %v2104_v1, %s2009_s18 }
  0x2f   : > { %685 = vrot.lane.b32.xlu1 %v548_v9, %s2011_s20 }
  0x32   : > { %633 = vrot.lane.b32.xlu0 %v2107_v2, %s2009_s18 }
  0x33   : > { %687 = vrot.lane.b32.xlu2 %v550_v16, %s2011_s20  ;;  %v2292_v16 = vld [vmem:[%s2098_s17 + $0xa0] sm:$0x3]  ;;  %s444_s17 = sadd.s32 %s1923_s26, %s2092_s11  ;;  %s1843_s26 = sshll.u32 %s2914_s27, 6 }
  0x34   : > { %s1838_s10 = sshll.u32 %s444_s17, 3  ;;  %s469_s17 = sadd.s32 %s1843_s26, %s1842_s25 }
  0x35   : > { %s2384_s14 = scalar_lea.vmem %s2896_s1, %s1838_s10  ;;  %s1844_s10 = sshll.u32 %s469_s17, 3 }
  0x36   : > { %s2641_s15 = scalar_lea.vmem %s2898_s3, %s1844_s10  ;;  %s2659_s16 = scalar_lea.vmem %s2902_s7, %s1844_s10 }
  0x37   : > { %929 = vrot.lane.b32.xlu1 %v2123_v10, %s2009_s18 }
  0x3a   : > { %905 = vrot.lane.b32.xlu0 %v549_v12, %s2010_s19 }
  0x3b   : > { %953 = vrot.lane.b32.xlu2 %v554_v13, %s2011_s20 }
  0x3f   : > { %927 = vrot.lane.b32.xlu1 %v2119_v8, %s2009_s18 }
  0x42   : > { %903 = vrot.lane.b32.xlu0 %v544_v18, %s2010_s19 }
  0x43   : > { %589 = vrot.lane.b32.xlu2 %v553_v11, %s2010_s19 }
  0x47   : > { %951 = vrot.lane.b32.xlu1 %v549_v12, %s2011_s20 }
  0x4a   : > { %591 = vrot.lane.b32.xlu0 %v555_v20, %s2010_s19  ;;  %v2296_v20 = vrot.slane %v2292_v16, 1 }
  0x4b   : > { %639 = vrot.lane.b32.xlu2 %v2167_v24, %s2009_s18 }
  0x4f   : > { %693 = vrot.lane.b32.xlu1 %v558_v28, %s2011_s20 }
  0x52   : > { %641 = vrot.lane.b32.xlu0 %v2170_v25, %s2009_s18 }
  0x53   : > { %695 = vrot.lane.b32.xlu2 %v560_v31, %s2011_s20 }
  0x57   : > { %931 = vrot.lane.b32.xlu1 %v2180_v29, %s2009_s18 }
  0x5a   : > { %907 = vrot.lane.b32.xlu0 %v554_v13, %s2010_s19 }
  0x5b   : > { %955 = vrot.lane.b32.xlu2 %v559_v30, %s2011_s20 }
  0x5f   : > { %595 = vrot.lane.b32.xlu1 %v560_v31, %s2010_s19 }
  0x62   : > { %593 = vrot.lane.b32.xlu0 %v558_v28, %s2010_s19 }
  0x63   : > { %643 = vrot.lane.b32.xlu2 %v2193_v32, %s2009_s18 }
  0x67   : > { %697 = vrot.lane.b32.xlu1 %v563_v36, %s2011_s20 }
  0x6a   : > { %645 = vrot.lane.b32.xlu0 %v2196_v33, %s2009_s18 }
  0x6b   : > { %699 = vrot.lane.b32.xlu2 %v565_v39, %s2011_s20 }
  0x6f   : > { %933 = vrot.lane.b32.xlu1 %v2206_v37, %s2009_s18 }
  0x72   : > { %909 = vrot.lane.b32.xlu0 %v559_v30, %s2010_s19 }
  0x73   : > { %957 = vrot.lane.b32.xlu2 %v564_v38, %s2011_s20 }
  0x75   : > { %v690_v44 = vpop.permute.xlu2 %689 }
  0x77   : > { %599 = vrot.lane.b32.xlu1 %v565_v39, %s2010_s19 }
  0x7a   : > { %597 = vrot.lane.b32.xlu0 %v563_v36, %s2010_s19 }
  0x7b   : > { %647 = vrot.lane.b32.xlu2 %v2225_v42, %s2009_s18 }
  0x7d   : > { %v692_v51 = vpop.permute.xlu2 %691 }
  0x7f   : > { %701 = vrot.lane.b32.xlu1 %v568_v49, %s2011_s20 }
  0x82   : > { %649 = vrot.lane.b32.xlu0 %v2228_v43, %s2009_s18 }
  0x83   : > { %703 = vrot.lane.b32.xlu2 %v570_v55, %s2011_s20 }
  0x85   : > { %v632_v56 = vpop.permute.xlu2 %631 }
  0x87   : > { %935 = vrot.lane.b32.xlu1 %v2244_v50, %s2009_s18 }
  0x89   : > { %v636_v59 = vpop.permute.xlu1 %635 }
  0x8a   : > { %911 = vrot.lane.b32.xlu0 %v564_v38, %s2010_s19 }
  0x8b   : > { %959 = vrot.lane.b32.xlu2 %v569_v52, %s2011_s20 }
  0x8c   : > { %v586_v60 = vpop.permute.xlu0 %585 }
  0x8d   : > { %v736_v61 = vsel %vm733_vm1, %v2104_v1, %v586_v60  ;;  %v688_v3 = vpop.permute.xlu2 %687  ;;  %v572_v1 = vrot.slane %v2274_v63, 1 }
  0x8e   : > { %v753_v4 = vsel %vm750_vm2, %v736_v61, %v636_v59  ;;  %v2358_v59 = vrot.slane %v2353_v57, 1 }
  0x8f   : > { %603 = vrot.lane.b32.xlu1 %v570_v55, %s2010_s19  ;;  %v2279_v5 = vsel %vm767_vm3, %v753_v4, %v690_v44  ;;  %v573_v12 = vsel %vm540_vm0, %v571_v7, %v572_v1  ;;  %v575_v27 = vsel %vm540_vm0, %v572_v1, %v2296_v20 }
  0x90   : > { %1885 = vmatmul.msk.f32.vlgmr.msra.gmra.mxu2 %vm789_vm4, %v2279_v5  ;;  %v1012_v22 = vrot.slane %v2279_v5, 1 }
  0x91   : > { %v638_v9 = vpop.permute.xlu1 %637 }
  0x92   : > { %601 = vrot.lane.b32.xlu0 %v568_v49, %s2010_s19 }
  0x93   : > { %651 = vrot.lane.b32.xlu2 %v2271_v62, %s2009_s18 }
  0x94   : > { %v588_v11 = vpop.permute.xlu0 %587 }
  0x95   : > { %v737_v13 = vsel %vm733_vm1, %v2107_v2, %v588_v11  ;;  %v954_v17 = vpop.permute.xlu2 %953 }
  0x96   : > { %v754_v18 = vsel %vm750_vm2, %v737_v13, %v638_v9 }
  0x97   : > { %705 = vrot.lane.b32.xlu1 %v573_v12, %s2011_s20  ;;  %v2300_v21 = vsel %vm767_vm3, %v754_v18, %v692_v51  ;;  %v2395_v18 = vld [vmem:[%s2384_s14 + $0x8] sm:$0xff] }
  0x98   : > { %v1013_v23 = vrot.slane %v2300_v21, 1  ;;  %1886 = vmatmul.msk.f32.gmra.mxu2 %vm789_vm4, %v2300_v21 }
  0x99   : > { %v584_v2 = vpop.permute.xlu1 %583 }
  0x9a   : > { %653 = vrot.lane.b32.xlu0 %v2274_v63, %s2009_s18  ;;  %v2309_v26 = vsel %vm540_vm0, %v1012_v22, %v1013_v23  ;;  %v735_v38 = vsel %vm733_vm1, %v2131_v14, %v584_v2  ;;  %v577_v14 = vrot.slane %v2335_v41, 1 }
  0x9b   : > { %1903 = vmatmul.msk.f32.vlgmr.msra.gmra.mxu3 %vm789_vm4, %v2309_v26  ;;  %707 = vrot.lane.b32.xlu2 %v575_v27, %s2011_s20 }
  0x9c   : > { %v582_v28 = vpop.permute.xlu0 %581  ;;  %v578_v53 = vsel %vm540_vm0, %v576_v48, %v577_v14 }
  0x9d   : > { %v2316_v30 = vpop.permute.xlu2 %589  ;;  %v734_v31 = vsel %vm733_vm1, %v2142_v19, %v582_v28 }
  0x9e   : > { %v751_v35 = vsel %vm750_vm2, %v734_v31, %v632_v56  ;;  %v738_v22 = vsel %vm733_vm1, %v2101_v0, %v2316_v30 }
  0x9f   : > { %937 = vrot.lane.b32.xlu1 %v2292_v16, %s2009_s18 }
  0xa1   : > { %v686_v34 = vpop.permute.xlu1 %685 }
  0xa2   : > { %913 = vrot.lane.b32.xlu0 %v569_v52, %s2010_s19  ;;  %v768_v36 = vsel %vm767_vm3, %v751_v35, %v686_v34 }
  0xa3   : > { %1849 = vmatmul.msk.f32.vlgmr.msra.gmra.mxu0 %vm789_vm4, %v768_v36  ;;  %961 = vrot.lane.b32.xlu2 %v2296_v20, %s2011_s20  ;;  %v1007_v46 = vrot.slane %v768_v36, 1 }
  0xa4   : > { %v634_v39 = vpop.permute.xlu0 %633 }
  0xa5   : > { %v752_v19 = vsel %vm750_vm2, %v735_v38, %v634_v39  ;;  %v640_v44 = vpop.permute.xlu2 %639  ;;  %v2422_v38 = vld [vmem:[%s2384_s14 + $0x10] sm:$0x3] }
  0xa6   : > { %v769_v45 = vsel %vm767_vm3, %v752_v19, %v688_v3  ;;  %v580_v3 = vsel %vm540_vm0, %v577_v14, %v2358_v59  ;;  %v755_v2 = vsel %vm750_vm2, %v738_v22, %v640_v44  ;;  %v2426_v19 = vrot.slane %v2422_v38, 1 }
  0xa7   : > { %v1008_v47 = vrot.slane %v769_v45, 1  ;;  %607 = vrot.lane.b32.xlu1 %v575_v27, %s2010_s19 }
  0xa9   : > { %v930_v49 = vpop.permute.xlu1 %929  ;;  %v1009_v51 = vsel %vm540_vm0, %v1007_v46, %v1008_v47 }
  0xaa   : > { %605 = vrot.lane.b32.xlu0 %v573_v12, %s2010_s19  ;;  %1867 = vmatmul.msk.f32.vlgmr.msra.gmra.mxu1 %vm789_vm4, %v1009_v51 }
  0xab   : > { %1850 = vmatmul.msk.f32.gmra.mxu0 %vm789_vm4, %v769_v45  ;;  %655 = vrot.lane.b32.xlu2 %v2332_v40, %s2009_s18 }
  0xac   : > { %v906_v52 = vpop.permute.xlu0 %905 }
  0xad   : > { %v976_v54 = vsel %vm733_vm1, %v2119_v8, %v906_v52  ;;  %v696_v55 = vpop.permute.xlu2 %695 }
  0xae   : > { %v984_v56 = vsel %vm750_vm2, %v976_v54, %v930_v49  ;;  %v511_v54 = vld [vmem:[%s459_s24] sm:$0xff] }
  0xaf   : > { %v992_v58 = vsel %vm767_vm3, %v984_v56, %v954_v17  ;;  %709 = vrot.lane.b32.xlu1 %v578_v53, %s2011_s20  ;;  %v2392_v17 = vld [vmem:[%s2384_s14] sm:$0xff] }
  0xb0   : > { %v1015_v60 = vrot.slane %v992_v58, 1 }
  0xb1   : > { %v928_v61 = vpop.permute.xlu1 %927 }
  0xb2   : > { %657 = vrot.lane.b32.xlu0 %v2335_v41, %s2009_s18  ;;  %v2363_v8 = vsel %vm540_vm0, %v1013_v23, %v1015_v60  ;;  %v681_v23 = vrot.slane %v2395_v18, 1 }
  0xb3   : > { %1851 = vmatmul.msk.f32.gmra.mxu0 %vm789_vm4, %v2279_v5  ;;  %1904 = vmatmul.msk.f32.gmra.mxu3 %vm789_vm4, %v2363_v8 }
  0xb4   : > { %v904_v4 = vpop.permute.xlu0 %903  ;;  %711 = vrot.lane.b32.xlu2 %v580_v3, %s2011_s20 }
  0xb5   : > { %v956_v7 = vpop.permute.xlu2 %955  ;;  %v975_v1 = vsel %vm733_vm1, %v2134_v15, %v904_v4 }
  0xb6   : > { %v983_v9 = vsel %vm750_vm2, %v975_v1, %v928_v61  ;;  %v513_v1 = vld [vmem:[%s459_s24 + $0x10] sm:$0x3] }
  0xb7   : > { %939 = vrot.lane.b32.xlu1 %v2353_v57, %s2009_s18 }
  0xb9   : > { %v952_v5 = vpop.permute.xlu1 %951 }
  0xba   : > { %v991_v11 = vsel %vm767_vm3, %v983_v9, %v952_v5  ;;  %915 = vrot.lane.b32.xlu0 %v2296_v20, %s2010_s19  ;;  %v1245_v9 = vrot.slane %v513_v1, 1 }
  0xbb   : > { %v1010_v15 = vrot.slane %v991_v11, 1  ;;  %1852 = vmatmul.msk.f32.gmra.mxu0 %vm789_vm4, %v2300_v21  ;;  %v680_v21 = vrot.slane %v2392_v17, 1 }
  0xbc   : > { %v592_v12 = vpop.permute.xlu0 %591  ;;  %963 = vrot.lane.b32.xlu2 %v2358_v59, %s2011_s20 }
  0xbd   : > { %v1011_v13 = vsel %vm540_vm0, %v1008_v47, %v1010_v15  ;;  %v2397_v20 = vpop.permute.xlu2 %643  ;;  %v739_v0 = vsel %vm733_vm1, %v2115_v6, %v592_v12  ;;  %v682_v31 = vsel %vm540_vm0, %v680_v21, %v681_v23 }
  0xbe   : > { %1868 = vmatmul.msk.f32.gmra.mxu1 %vm789_vm4, %v1011_v13 }
  0xbf   : > { %611 = vrot.lane.b32.xlu1 %v580_v3, %s2010_s19 }
  0xc1   : > { %v694_v27 = vpop.permute.xlu1 %693 }
  0xc2   : > { %609 = vrot.lane.b32.xlu0 %v578_v53, %s2010_s19  ;;  %v772_v28 = vsel %vm767_vm3, %v755_v2, %v694_v27 }
  0xc3   : > { %1853 = vmatmul.msk.f32.gmra.mxu0 %vm789_vm4, %v772_v28  ;;  %1887 = vmatmul.msk.f32.gmra.mxu2 %vm789_vm4, %v772_v28  ;;  %v1017_v39 = vrot.slane %v772_v28, 1 }
  0xc4   : > { %v642_v30 = vpop.permute.xlu0 %641  ;;  %659 = vrot.lane.b32.xlu2 %v2392_v17, %s2009_s18 }
  0xc5   : > { %v756_v34 = vsel %vm750_vm2, %v739_v0, %v642_v30  ;;  %v700_v35 = vpop.permute.xlu2 %699 }
  0xc6   : > { %v773_v36 = vsel %vm767_vm3, %v756_v34, %v696_v55  ;;  %1869 = vmatmul.msk.f32.gmra.mxu1 %vm789_vm4, %v2309_v26  ;;  %v684_v26 = vsel %vm540_vm0, %v681_v23, %v2426_v19  ;;  %v512_v55 = vld [vmem:[%s459_s24 + $0x8] sm:$0xff] }
  0xc7   : > { %v1018_v6 = vrot.slane %v773_v36, 1  ;;  %713 = vrot.lane.b32.xlu1 %v682_v31, %s2011_s20  ;;  %v1243_v60 = vrot.slane %v512_v55, 1 }
  0xc9   : > { %v932_v44 = vpop.permute.xlu1 %931  ;;  %v1019_v45 = vsel %vm540_vm0, %v1017_v39, %v1018_v6  ;;  %v1246_v22 = vsel %vm540_vm0, %v1243_v60, %v1245_v9 }
  0xca   : > { %661 = vrot.lane.b32.xlu0 %v2395_v18, %s2009_s18  ;;  %1905 = vmatmul.msk.f32.gmra.mxu3 %vm789_vm4, %v1019_v45 }
  0xcb   : > { %1854 = vmatmul.msk.f32.gmra.mxu0 %vm789_vm4, %v773_v36  ;;  %1888 = vmatmul.msk.f32.gmra.mxu2 %vm789_vm4, %v773_v36 }
  0xcc   : > { %v908_v46 = vpop.permute.xlu0 %907  ;;  %715 = vrot.lane.b32.xlu2 %v684_v26, %s2011_s20 }
  0xcd   : > { %v977_v47 = vsel %vm733_vm1, %v2123_v10, %v908_v46  ;;  %v958_v48 = vpop.permute.xlu2 %957 }
  0xce   : > { %v985_v14 = vsel %vm750_vm2, %v977_v47, %v932_v44  ;;  %1870 = vmatmul.msk.f32.gmra.mxu1 %vm789_vm4, %v2363_v8 }
  0xcf   : > { %v993_v49 = vsel %vm767_vm3, %v985_v14, %v956_v7  ;;  %941 = vrot.lane.b32.xlu1 %v2422_v38, %s2009_s18 }
  0xd0   : > { %v1020_v51 = vrot.slane %v993_v49, 1 }
  0xd1   : > { %v596_v52 = vpop.permute.xlu1 %595 }
  0xd2   : > { %917 = vrot.lane.b32.xlu0 %v2358_v59, %s2010_s19  ;;  %v1021_v53 = vsel %vm540_vm0, %v1018_v6, %v1020_v51  ;;  %v1242_v59 = vrot.slane %v511_v54, 1 }
  0xd3   : > { %1906 = vmatmul.msk.f32.gmra.mxu3 %vm789_vm4, %v1021_v53 }
  0xd4   : > { %v594_v10 = vpop.permute.xlu0 %593  ;;  %965 = vrot.lane.b32.xlu2 %v2426_v19, %s2011_s20  ;;  %v1244_v7 = vsel %vm540_vm0, %v1242_v59, %v1243_v60 }
  0xd5   : > { %v648_v56 = vpop.permute.xlu2 %647  ;;  %v740_v58 = vsel %vm733_vm1, %v2167_v24, %v594_v10  ;;  %v741_v24 = vsel %vm733_vm1, %v2170_v25, %v596_v52 }
  0xd6   : > { %1871 = vmatmul.msk.f32.gmra.mxu1 %vm789_vm4, %v1019_v45  ;;  %v757_v61 = vsel %vm750_vm2, %v740_v58, %v2397_v20 }
  0xd7   : > { %1229 = vrot.lane.b32.xlu1 %v684_v26, %s2010_s19 }
  0xd9   : > { %v698_v8 = vpop.permute.xlu1 %697 }
  0xda   : > { %1227 = vrot.lane.b32.xlu0 %v682_v31, %s2010_s19  ;;  %v774_v3 = vsel %vm767_vm3, %v757_v61, %v698_v8 }
  0xdb   : > { %1855 = vmatmul.msk.f32.gmra.mxu0 %vm789_vm4, %v774_v3  ;;  %1889 = vmatmul.msk.f32.gmra.mxu2 %vm789_vm4, %v774_v3  ;;  %v1022_v12 = vrot.slane %v774_v3, 1 }
  0xdc   : > { %v646_v4 = vpop.permute.xlu0 %645  ;;  %1235 = vrot.lane.b32.xlu2 %v511_v54, %s2009_s18 }
  0xdd   : > { %v758_v5 = vsel %vm750_vm2, %v741_v24, %v646_v4  ;;  %v704_v11 = vpop.permute.xlu2 %703 }
  0xde   : > { %v775_v15 = vsel %vm767_vm3, %v758_v5, %v700_v35  ;;  %1872 = vmatmul.msk.f32.gmra.mxu1 %vm789_vm4, %v1021_v53 }
  0xdf   : > { %v1023_v13 = vrot.slane %v775_v15, 1  ;;  %1247 = vrot.lane.b32.xlu1 %v1244_v7, %s2011_s20 }
  0xe1   : > { %v934_v20 = vpop.permute.xlu1 %933  ;;  %v1024_v25 = vsel %vm540_vm0, %v1022_v12, %v1023_v13 }
  0xe2   : > { %1237 = vrot.lane.b32.xlu0 %v512_v55, %s2009_s18  ;;  %1907 = vmatmul.msk.f32.gmra.mxu3 %vm789_vm4, %v1024_v25 }
  0xe3   : > { %1856 = vmatmul.msk.f32.gmra.mxu0 %vm789_vm4, %v775_v15  ;;  %1890 = vmatmul.msk.f32.gmra.mxu2 %vm789_vm4, %v775_v15 }
  0xe4   : > { %v910_v21 = vpop.permute.xlu0 %909  ;;  %1249 = vrot.lane.b32.xlu2 %v1246_v22, %s2011_s20 }
  0xe5   : > { %v978_v23 = vsel %vm733_vm1, %v2180_v29, %v910_v21  ;;  %v960_v2 = vpop.permute.xlu2 %959  ;;  %v2539_v21 = vld [vmem:[%s2900_s5] ss:$0 sm:$0xff] }
  0xe6   : > { %v986_v27 = vsel %vm750_vm2, %v978_v23, %v934_v20  ;;  %1873 = vmatmul.msk.f32.gmra.mxu1 %vm789_vm4, %v1024_v25 }
  0xe7   : > { %v994_v28 = vsel %vm767_vm3, %v986_v27, %v958_v48  ;;  %1336 = vrot.lane.b32.xlu1 %v513_v1, %s2009_s18 }
  0xe8   : > { %v1025_v0 = vrot.slane %v994_v28, 1 }
  0xe9   : > { %v600_v30 = vpop.permute.xlu1 %599 }
  0xea   : > { %1333 = vrot.lane.b32.xlu0 %v2426_v19, %s2010_s19  ;;  %v1026_v31 = vsel %vm540_vm0, %v1023_v13, %v1025_v0  ;;  %v743_v19 = vsel %vm733_vm1, %v2196_v33, %v600_v30 }
  0xeb   : > { %1908 = vmatmul.msk.f32.gmra.mxu3 %vm789_vm4, %v1026_v31 }
  0xec   : > { %v598_v34 = vpop.permute.xlu0 %597  ;;  %1339 = vrot.lane.b32.xlu2 %v1245_v9, %s2011_s20 }
  0xed   : > { %v652_v29 = vpop.permute.xlu2 %651  ;;  %v742_v35 = vsel %vm733_vm1, %v2193_v32, %v598_v34 }
  0xee   : > { %1874 = vmatmul.msk.f32.gmra.mxu1 %vm789_vm4, %v1026_v31  ;;  %v759_v36 = vsel %vm750_vm2, %v742_v35, %v648_v56 }
  0xf1   : > { %v702_v39 = vpop.permute.xlu1 %701 }
  0xf2   : > { %v776_v6 = vsel %vm767_vm3, %v759_v36, %v702_v39 }
  0xf3   : > { %1857 = vmatmul.msk.f32.gmra.mxu0 %vm789_vm4, %v776_v6  ;;  %1891 = vmatmul.msk.f32.gmra.mxu2 %vm789_vm4, %v776_v6  ;;  %v1027_v32 = vrot.slane %v776_v6, 1 }
  0xf4   : > { %v650_v44 = vpop.permute.xlu0 %649 }
  0xf5   : > { %v760_v45 = vsel %vm750_vm2, %v743_v19, %v650_v44  ;;  %v708_v47 = vpop.permute.xlu2 %707 }
  0xf6   : > { %v777_v26 = vsel %vm767_vm3, %v760_v45, %v704_v11 }
  0xf7   : > { %v1028_v46 = vrot.slane %v777_v26, 1 }
  0xf9   : > { %v936_v48 = vpop.permute.xlu1 %935  ;;  %v1029_v14 = vsel %vm540_vm0, %v1027_v32, %v1028_v46 }
  0xfa   : > { %1875 = vmatmul.msk.f32.gmra.mxu1 %vm789_vm4, %v1029_v14  ;;  %1909 = vmatmul.msk.f32.gmra.mxu3 %vm789_vm4, %v1029_v14 }
  0xfb   : > { %1858 = vmatmul.msk.f32.gmra.mxu0 %vm789_vm4, %v777_v26  ;;  %1892 = vmatmul.msk.f32.gmra.mxu2 %vm789_vm4, %v777_v26 }
  0xfc   : > { %v912_v33 = vpop.permute.xlu0 %911 }
  0xfd   : > { %v979_v49 = vsel %vm733_vm1, %v2206_v37, %v912_v33  ;;  %v962_v54 = vpop.permute.xlu2 %961 }
  0xfe   : > { %v987_v51 = vsel %vm750_vm2, %v979_v49, %v936_v48 }
  0xff   : > { %v995_v52 = vsel %vm767_vm3, %v987_v51, %v960_v2 }
 0x100   : > { %v1030_v53 = vrot.slane %v995_v52, 1 }
 0x101   : > { %v604_v10 = vpop.permute.xlu1 %603 }
 0x102   : > { %v1031_v55 = vsel %vm540_vm0, %v1028_v46, %v1030_v53  ;;  %v745_v8 = vsel %vm733_vm1, %v2228_v43, %v604_v10 }
 0x103   : > { %1876 = vmatmul.msk.f32.gmra.mxu1 %vm789_vm4, %v1031_v55  ;;  %1910 = vmatmul.msk.f32.gmra.mxu3 %vm789_vm4, %v1031_v55 }
 0x104   : > { %v602_v56 = vpop.permute.xlu0 %601 }
 0x105   : > { %v744_v58 = vsel %vm733_vm1, %v2225_v42, %v602_v56  ;;  %v656_v61 = vpop.permute.xlu2 %655 }
 0x106   : > { %v761_v59 = vsel %vm750_vm2, %v744_v58, %v652_v29 }
 0x109   : > { %v706_v37 = vpop.permute.xlu1 %705 }
 0x10a   : > { %v778_v60 = vsel %vm767_vm3, %v761_v59, %v706_v37 }
 0x10b   : > { %1859 = vmatmul.msk.f32.gmra.mxu0 %vm789_vm4, %v778_v60  ;;  %1893 = vmatmul.msk.f32.gmra.mxu2 %vm789_vm4, %v778_v60  ;;  %v1032_v7 = vrot.slane %v778_v60, 1 }
 0x10c   : > { %v654_v3 = vpop.permute.xlu0 %653 }
 0x10d   : > { %v762_v24 = vsel %vm750_vm2, %v745_v8, %v654_v3 }
 0x10e   : > { %v779_v4 = vsel %vm767_vm3, %v762_v24, %v708_v47  ;;  %v712_v11 = vpop.permute.xlu2 %711 }
 0x10f   : > { %v1033_v42 = vrot.slane %v779_v4, 1 }
 0x111   : > { %v938_v1 = vpop.permute.xlu1 %937  ;;  %v1034_v5 = vsel %vm540_vm0, %v1032_v7, %v1033_v42 }
 0x112   : > { %1877 = vmatmul.msk.f32.gmra.mxu1 %vm789_vm4, %v1034_v5  ;;  %1911 = vmatmul.msk.f32.gmra.mxu3 %vm789_vm4, %v1034_v5 }
 0x113   : > { %1860 = vmatmul.msk.f32.gmra.mxu0 %vm789_vm4, %v779_v4  ;;  %1894 = vmatmul.msk.f32.gmra.mxu2 %vm789_vm4, %v779_v4 }
 0x114   : > { %v914_v9 = vpop.permute.xlu0 %913 }
 0x115   : > { %v980_v43 = vsel %vm733_vm1, %v2244_v50, %v914_v9 }
 0x116   : > { %v988_v15 = vsel %vm750_vm2, %v980_v43, %v938_v1  ;;  %v964_v27 = vpop.permute.xlu2 %963 }
 0x117   : > { %v996_v12 = vsel %vm767_vm3, %v988_v15, %v962_v54 }
 0x118   : > { %v1035_v13 = vrot.slane %v996_v12, 1 }
 0x119   : > { %v608_v20 = vpop.permute.xlu1 %607 }
 0x11a   : > { %v1036_v25 = vsel %vm540_vm0, %v1033_v42, %v1035_v13  ;;  %v747_v31 = vsel %vm733_vm1, %v2274_v63, %v608_v20 }
 0x11b   : > { %1878 = vmatmul.msk.f32.gmra.mxu1 %vm789_vm4, %v1036_v25  ;;  %1912 = vmatmul.msk.f32.gmra.mxu3 %vm789_vm4, %v1036_v25 }
 0x11c   : > { %v606_v22 = vpop.permute.xlu0 %605 }
 0x11d   : > { %v746_v50 = vsel %vm733_vm1, %v2271_v62, %v606_v22 }
 0x11e   : > { %v1375_v23 = vpop.f32.mrf.mxu3  ;;  %v763_v28 = vsel %vm750_vm2, %v746_v50, %v656_v61  ;;  %v660_v45 = vpop.permute.xlu2 %659 }
 0x11f   : > { %v1376_v2 = vadd.f32 %v2539_v21, %v1375_v23 }
 0x121   : > { %1439 = vrot.lane.b32.xlu1 %v1376_v2, %s2010_s19  ;;  %v710_v0 = vpop.permute.xlu1 %709 }
 0x122   : > { %v780_v30 = vsel %vm767_vm3, %v763_v28, %v710_v0 }
 0x123   : > { %1861 = vmatmul.msk.f32.gmra.mxu0 %vm789_vm4, %v780_v30  ;;  %1895 = vmatmul.msk.f32.gmra.mxu2 %vm789_vm4, %v780_v30  ;;  %v1037_v35 = vrot.slane %v780_v30, 1 }
 0x124   : > { %v658_v34 = vpop.permute.xlu0 %657 }
 0x125   : > { %v764_v62 = vsel %vm750_vm2, %v747_v31, %v658_v34 }
 0x126   : > { %v781_v29 = vsel %vm767_vm3, %v764_v62, %v712_v11  ;;  %v716_v33 = vpop.permute.xlu2 %715 }
 0x127   : > { %v1038_v36 = vrot.slane %v781_v29, 1  ;;  %v1099_v39 = vpop.f32.mrf.mxu1 }
 0x128   : > { %v1100_v6 = vadd.f32 %v2539_v21, %v1099_v39 }
 0x129   : > { %v940_v19 = vpop.permute.xlu1 %939  ;;  %v1039_v44 = vsel %vm540_vm0, %v1037_v35, %v1038_v36 }
 0x12a   : > { %1163 = vrot.lane.b32.xlu0 %v1100_v6, %s2010_s19  ;;  %1879 = vmatmul.msk.f32.gmra.mxu1 %vm789_vm4, %v1039_v44 }
 0x12b   : > { %1913 = vmatmul.msk.f32.gmra.mxu3 %vm789_vm4, %v1039_v44  ;;  %1862 = vmatmul.msk.f32.gmra.mxu0 %vm789_vm4, %v781_v29 }
 0x12c   : > { %1896 = vmatmul.msk.f32.gmra.mxu2 %vm789_vm4, %v781_v29  ;;  %v916_v63 = vpop.permute.xlu0 %915 }
 0x12d   : > { %v981_v26 = vsel %vm733_vm1, %v2292_v16, %v916_v63 }
 0x12e   : > { %v989_v32 = vsel %vm750_vm2, %v981_v26, %v940_v19  ;;  %v966_v37 = vpop.permute.xlu2 %965 }
 0x12f   : > { %v997_v46 = vsel %vm767_vm3, %v989_v32, %v964_v27 }
 0x130   : > { %v1040_v47 = vrot.slane %v997_v46, 1 }
 0x131   : > { %v612_v48 = vpop.permute.xlu1 %611 }
 0x132   : > { %v1041_v14 = vsel %vm540_vm0, %v1038_v36, %v1040_v47  ;;  %v749_v56 = vsel %vm733_vm1, %v2335_v41, %v612_v48 }
 0x133   : > { %1880 = vmatmul.msk.f32.gmra.mxu1 %vm789_vm4, %v1041_v14  ;;  %1914 = vmatmul.msk.f32.gmra.mxu3 %vm789_vm4, %v1041_v14 }
 0x134   : > { %v610_v49 = vpop.permute.xlu0 %609 }
 0x135   : > { %v748_v51 = vsel %vm733_vm1, %v2332_v40, %v610_v49 }
 0x136   : > { %v1378_v52 = vpop.f32.mrf.mxu3  ;;  %v765_v53 = vsel %vm750_vm2, %v748_v51, %v660_v45  ;;  %v1236_v9 = vpop.permute.xlu2 %1235 }
 0x137   : > { %v1379_v16 = vadd.f32 %v2539_v21, %v1378_v52 }
 0x139   : > { %v714_v10 = vpop.permute.xlu1 %713  ;;  %1441 = vrot.lane.b32.xlu2 %v1379_v16, %s2010_s19 }
 0x13a   : > { %v782_v54 = vsel %vm767_vm3, %v765_v53, %v714_v10  ;;  %v1285_v10 = vpop.f32.mrf.mxu2 }
 0x13b   : > { %1863 = vmatmul.msk.f32.gmra.mxu0 %vm789_vm4, %v782_v54  ;;  %v1102_v55 = vpop.f32.mrf.mxu1  ;;  %1897 = vmatmul.msk.f32.gmra.mxu2 %vm789_vm4, %v782_v54  ;;  %v1042_v61 = vrot.slane %v782_v54, 1 }
 0x13c   : > { %v1103_v40 = vadd.f32 %v2539_v21, %v1102_v55  ;;  %v662_v58 = vpop.permute.xlu0 %661 }
 0x13d   : > { %v766_v59 = vsel %vm750_vm2, %v749_v56, %v662_v58 }
 0x13e   : > { %v783_v60 = vsel %vm767_vm3, %v766_v59, %v716_v33  ;;  %1165 = vrot.lane.b32.xlu1 %v1103_v40, %s2010_s19  ;;  %v1250_v50 = vpop.permute.xlu2 %1249  ;;  %v855_v40 = vpop.f32.mrf.mxu0 }
 0x13f   : > { %v1043_v8 = vrot.slane %v783_v60, 1 }
 0x141   : > { %v942_v3 = vpop.permute.xlu1 %941  ;;  %v1044_v24 = vsel %vm540_vm0, %v1042_v61, %v1043_v8 }
 0x142   : > { %1881 = vmatmul.msk.f32.gmra.mxu1 %vm789_vm4, %v1044_v24  ;;  %1915 = vmatmul.msk.f32.gmra.mxu3 %vm789_vm4, %v1044_v24  ;;  %v1288_v59 = vpop.f32.mrf.mxu2  ;;  %v1505_v24 = vld [vmem:[%s2641_s15 + $0x10] sm:$0xff] }
 0x143   : > { %1864 = vmatmul.msk.f32.gmra.mxu0 %vm789_vm4, %v783_v60  ;;  %v1105_v41 = vpop.f32.mrf.mxu1  ;;  %1898 = vmatmul.msk.f32.gmra.mxu2 %vm789_vm4, %v783_v60  ;;  %v1286_v60 = vadd.f32 %v2539_v21, %v1285_v10  ;;  %v1289_v61 = vadd.f32 %v2539_v21, %v1288_v59 }
 0x144   : > { %v1106_v4 = vadd.f32 %v2539_v21, %v1105_v41  ;;  %v918_v7 = vpop.permute.xlu0 %917  ;;  %v1506_v41 = vld [vmem:[%s2641_s15 + $0x18] sm:$0xff] }
 0x145   : > { %v982_v42 = vsel %vm733_vm1, %v2353_v57, %v918_v7 }
 0x146   : > { %v990_v1 = vsel %vm750_vm2, %v982_v42, %v942_v3  ;;  %1167 = vrot.lane.b32.xlu2 %v1106_v4, %s2010_s19  ;;  %v1340_v36 = vpop.permute.xlu2 %1339  ;;  %v2649_v42 = vstv %s515_s12 }
 0x147   : > { %v998_v5 = vsel %vm767_vm3, %v990_v1, %v966_v37 }
 0x148   : > { %v1045_v43 = vrot.slane %v998_v5, 1 }
 0x149   : > { %v1230_v11 = vpop.permute.xlu1 %1229 }
 0x14a   : > { %v1046_v15 = vsel %vm540_vm0, %v1043_v8, %v1045_v43  ;;  %v1254_v27 = vsel %vm733_vm1, %v2395_v18, %v1230_v11  ;;  %v858_v8 = vpop.f32.mrf.mxu0 }
 0x14b   : > { %1882 = vmatmul.msk.f32.gmra.mxu1 %vm789_vm4, %v1046_v15  ;;  %1916 = vmatmul.msk.f32.gmra.mxu3 %vm789_vm4, %v1046_v15  ;;  %v1108_v23 = vpop.f32.mrf.mxu1 }
 0x14c   : > { %v1228_v12 = vpop.permute.xlu0 %1227 }
 0x14d   : > { %v1381_v13 = vpop.f32.mrf.mxu3  ;;  %v1253_v57 = vsel %vm733_vm1, %v2392_v17, %v1228_v12  ;;  %v1109_v17 = vadd.f32 %v2539_v21, %v1108_v23 }
 0x14e   : > { %v1382_v20 = vadd.f32 %v2539_v21, %v1381_v13  ;;  %v1255_v25 = vsel %vm750_vm2, %v1253_v57, %v1236_v9 }
 0x150   : > { %1443 = vrot.lane.b32.xlu0 %v1382_v20, %s2010_s19 }
 0x151   : > { %v1248_v22 = vpop.permute.xlu1 %1247 }
 0x152   : > { %v1257_v2 = vsel %vm767_vm3, %v1255_v25, %v1248_v22  ;;  %v856_v25 = vadd.f32 %v2539_v21, %v855_v40  ;;  %v861_v23 = vpop.f32.mrf.mxu0 }
 0x153   : > { %1899 = vmatmul.msk.f32.gmra.mxu2 %vm789_vm4, %v1257_v2  ;;  %v1346_v34 = vrot.slane %v1257_v2, 1  ;;  %v1111_v39 = vpop.f32.mrf.mxu1 }
 0x154   : > { %v1238_v28 = vpop.permute.xlu0 %1237  ;;  %v1112_v45 = vadd.f32 %v2539_v21, %v1111_v39 }
 0x155   : > { %v1256_v0 = vsel %vm750_vm2, %v1254_v27, %v1238_v28 }
 0x156   : > { %v1258_v30 = vsel %vm767_vm3, %v1256_v0, %v1250_v50  ;;  %v1384_v31 = vpop.f32.mrf.mxu3  ;;  %v1503_v50 = vld [vmem:[%s2641_s15] sm:$0xff] }
 0x157   : > { %v1347_v62 = vrot.slane %v1258_v30, 1  ;;  %v1385_v29 = vadd.f32 %v2539_v21, %v1384_v31 }
 0x158   : > { %1169 = vrot.lane.b32.xlu0 %v1109_v17, %s2010_s19 }
 0x159   : > { %1445 = vrot.lane.b32.xlu1 %v1385_v29, %s2010_s19  ;;  %v1348_v35 = vsel %vm540_vm0, %v1346_v34, %v1347_v62  ;;  %v1337_v18 = vpop.permute.xlu1 %1336  ;;  %v1507_v34 = vld [vmem:[%s2641_s15 + $0x20] sm:$0xff] }
 0x15a   : > { %1917 = vmatmul.msk.f32.gmra.mxu3 %vm789_vm4, %v1348_v35 }
 0x15b   : > { %1900 = vmatmul.msk.f32.gmra.mxu2 %vm789_vm4, %v1258_v30  ;;  %v862_v30 = vadd.f32 %v2539_v21, %v861_v23  ;;  %v1508_v23 = vld [vmem:[%s2641_s15 + $0x28] sm:$0xff] }
 0x15c   : > { %v1334_v6 = vpop.permute.xlu0 %1333 }
 0x15d   : > { %v1342_v19 = vsel %vm733_vm1, %v2422_v38, %v1334_v6  ;;  %v1114_v38 = vpop.f32.mrf.mxu1 }
 0x15e   : > { %v1343_v44 = vsel %vm750_vm2, %v1342_v19, %v1337_v18  ;;  %v1115_v48 = vadd.f32 %v2539_v21, %v1114_v38 }
 0x15f   : > { %v1344_v63 = vsel %vm767_vm3, %v1343_v44, %v1340_v36 }
 0x160   : > { %v1349_v26 = vrot.slane %v1344_v63, 1 }
 0x161   : > { %1171 = vrot.lane.b32.xlu1 %v1112_v45, %s2010_s19  ;;  %v1291_v45 = vpop.f32.mrf.mxu2 }
 0x162   : > { %v1350_v32 = vsel %vm540_vm0, %v1347_v62, %v1349_v26 }
 0x163   : > { %1918 = vmatmul.msk.f32.gmra.mxu3 %vm789_vm4, %v1350_v32  ;;  %v859_v32 = vadd.f32 %v2539_v21, %v858_v8  ;;  %v1509_v8 = vld [vmem:[%s2641_s15 + $0x30] sm:$0xff] }
 0x165   : > { %v1387_v46 = vpop.f32.mrf.mxu3  ;;  %v1117_v49 = vpop.f32.mrf.mxu1 }
 0x166   : > { %v1388_v47 = vadd.f32 %v2539_v21, %v1387_v46  ;;  %v1118_v51 = vadd.f32 %v2539_v21, %v1117_v49 }
 0x168   : > { %1447 = vrot.lane.b32.xlu2 %v1388_v47, %s2010_s19  ;;  %v1504_v47 = vld [vmem:[%s2641_s15 + $0x8] sm:$0xff] }
 0x16d   : > { %v1120_v53 = vpop.f32.mrf.mxu1 }
 0x16e   : > { %v1390_v14 = vpop.f32.mrf.mxu3  ;;  %v1121_v54 = vadd.f32 %v2539_v21, %v1120_v53 }
 0x16f   : > { %v1391_v33 = vadd.f32 %v2539_v21, %v1390_v14  ;;  %v864_v14 = vpop.f32.mrf.mxu0 }
 0x170   : > { %1173 = vrot.lane.b32.xlu2 %v1115_v48, %s2010_s19 }
 0x171   : > { %1449 = vrot.lane.b32.xlu0 %v1391_v33, %s2010_s19 }
 0x177   : > { %v1123_v58 = vpop.f32.mrf.mxu1 }
 0x178   : > { %v1124_v37 = vadd.f32 %v2539_v21, %v1123_v58 }
 0x179   : > { %1175 = vrot.lane.b32.xlu0 %v1118_v51, %s2010_s19  ;;  %v1294_v51 = vpop.f32.mrf.mxu2 }
 0x17d   : > { %v1393_v52 = vpop.f32.mrf.mxu3 }
 0x17e   : > { %v1394_v16 = vadd.f32 %v2539_v21, %v1393_v52 }
 0x180   : > { %1451 = vrot.lane.b32.xlu1 %v1394_v16, %s2010_s19  ;;  %v1126_v3 = vpop.f32.mrf.mxu1 }
 0x181   : > { %v1127_v28 = vadd.f32 %v2539_v21, %v1126_v3 }
 0x186   : > { %v1396_v55 = vpop.f32.mrf.mxu3 }
 0x187   : > { %v1397_v56 = vadd.f32 %v2539_v21, %v1396_v55  ;;  %v867_v55 = vpop.f32.mrf.mxu0 }
 0x188   : > { %1177 = vrot.lane.b32.xlu1 %v1121_v54, %s2010_s19 }
 0x189   : > { %1453 = vrot.lane.b32.xlu2 %v1397_v56, %s2010_s19  ;;  %v1297_v56 = vpop.f32.mrf.mxu2 }
 0x18f   : > { %v1129_v22 = vpop.f32.mrf.mxu1 }
 0x190   : > { %v1130_v44 = vadd.f32 %v2539_v21, %v1129_v22 }
 0x191   : > { %1179 = vrot.lane.b32.xlu2 %v1124_v37, %s2010_s19  ;;  %v1292_v37 = vadd.f32 %v2539_v21, %v1291_v45 }
 0x193   : > { %v1440_v4 = vpop.permute.xlu1 %1439  ;;  %v1442_v7 = vpop.permute.xlu2 %1441 }
 0x194   : > { %v1487_v1 = vsel %vm733_vm1, %v1286_v60, %v1440_v4  ;;  %v1488_v5 = vsel %vm733_vm1, %v1289_v61, %v1442_v7  ;;  %v1298_v60 = vadd.f32 %v2539_v21, %v1297_v56  ;;  %v1513_v61 = vld [vmem:[%s2641_s15 + $0x50] sm:$0xff] }
 0x195   : > { %v1537_v9 = vsub.f32 %v1487_v1, %v1505_v24  ;;  %v1538_v43 = vsub.f32 %v1488_v5, %v1506_v41  ;;  %v1399_v11 = vpop.f32.mrf.mxu3 }
 0x196   : > { %v1400_v15 = vadd.f32 %v2539_v21, %v1399_v11 }
 0x197   : > { %v1570_v12 = vmul.f32 %v2649_v42, %v1537_v9  ;;  %v1571_v13 = vmul.f32 %v2649_v42, %v1538_v43  ;;  %v870_v9 = vpop.f32.mrf.mxu0 }
 0x198   : > { %1455 = vrot.lane.b32.xlu0 %v1400_v15, %s2010_s19  ;;  %v1132_v6 = vpop.f32.mrf.mxu1 }
 0x199   : > { %v1602_v57 = vadd.f32 %v1570_v12, %v1505_v24  ;;  %v1603_v20 = vadd.f32 %v1571_v13, %v1506_v41  ;;  %v1133_v53 = vadd.f32 %v2539_v21, %v1132_v6 }
 0x19b   : > { %1634 = vst.msk [vmem:[%s2659_s16 + $0x10] sm:$0xff] %vm750_vm2, %v1602_v57 }
 0x19c   : > { %1635 = vst.msk [vmem:[%s2659_s16 + $0x18] sm:$0xff] %vm750_vm2, %v1603_v20  ;;  %v1164_v2 = vpop.permute.xlu0 %1163  ;;  %v865_v20 = vadd.f32 %v2539_v21, %v864_v14 }
 0x19d   : > { %v1211_v27 = vsel %vm733_vm1, %v856_v25, %v1164_v2  ;;  %v871_v25 = vadd.f32 %v2539_v21, %v870_v9  ;;  %v1295_v2 = vadd.f32 %v2539_v21, %v1294_v51 }
 0x19e   : > { %v1535_v0 = vsub.f32 %v1211_v27, %v1503_v50  ;;  %v1402_v17 = vpop.f32.mrf.mxu3 }
 0x19f   : > { %v1403_v31 = vadd.f32 %v2539_v21, %v1402_v17 }
 0x1a0   : > { %v1568_v62 = vmul.f32 %v2649_v42, %v1535_v0  ;;  %v1168_v29 = vpop.permute.xlu2 %1167  ;;  %1181 = vrot.lane.b32.xlu0 %v1127_v28, %s2010_s19  ;;  %v1510_v0 = vld [vmem:[%s2641_s15 + $0x38] sm:$0xff] }
 0x1a1   : > { %v1213_v35 = vsel %vm733_vm1, %v862_v30, %v1168_v29  ;;  %1457 = vrot.lane.b32.xlu1 %v1403_v31, %s2010_s19 }
 0x1a2   : > { %v1600_v18 = vadd.f32 %v1568_v62, %v1503_v50  ;;  %v1539_v36 = vsub.f32 %v1213_v35, %v1507_v34  ;;  %v1512_v50 = vld [vmem:[%s2641_s15 + $0x48] sm:$0xff]  ;;  %v1300_v35 = vpop.f32.mrf.mxu2 }
 0x1a4   : > { %1632 = vst.msk [vmem:[%s2659_s16] sm:$0xff] %vm750_vm2, %v1600_v18  ;;  %v1572_v39 = vmul.f32 %v2649_v42, %v1539_v36 }
 0x1a6   : > { %v1604_v19 = vadd.f32 %v1572_v39, %v1507_v34 }
 0x1a7   : > { %v1135_v63 = vpop.f32.mrf.mxu1 }
 0x1a8   : > { %1636 = vst.msk [vmem:[%s2659_s16 + $0x20] sm:$0xff] %vm750_vm2, %v1604_v19  ;;  %v1136_v40 = vadd.f32 %v2539_v21, %v1135_v63  ;;  %v873_v63 = vpop.f32.mrf.mxu0 }
 0x1a9   : > { %1183 = vrot.lane.b32.xlu1 %v1130_v44, %s2010_s19 }
 0x1ae   : > { %v1405_v26 = vpop.f32.mrf.mxu3 }
 0x1af   : > { %v1406_v46 = vadd.f32 %v2539_v21, %v1405_v26 }
 0x1b0   : > { %v1166_v38 = vpop.permute.xlu1 %1165  ;;  %v1138_v10 = vpop.f32.mrf.mxu1 }
 0x1b1   : > { %v1212_v48 = vsel %vm733_vm1, %v859_v32, %v1166_v38  ;;  %1459 = vrot.lane.b32.xlu2 %v1406_v46, %s2010_s19  ;;  %v1139_v36 = vadd.f32 %v2539_v21, %v1138_v10  ;;  %v1511_v38 = vld [vmem:[%s2641_s15 + $0x40] sm:$0xff] }
 0x1b2   : > { %v1536_v33 = vsub.f32 %v1212_v48, %v1504_v47 }
 0x1b4   : > { %v1569_v49 = vmul.f32 %v2649_v42, %v1536_v33  ;;  %v1303_v33 = vpop.f32.mrf.mxu2 }
 0x1b6   : > { %v1601_v52 = vadd.f32 %v1569_v49, %v1504_v47  ;;  %v1408_v16 = vpop.f32.mrf.mxu3  ;;  %v868_v47 = vadd.f32 %v2539_v21, %v867_v55  ;;  %v1301_v55 = vadd.f32 %v2539_v21, %v1300_v35 }
 0x1b7   : > { %v1409_v54 = vadd.f32 %v2539_v21, %v1408_v16  ;;  %v876_v16 = vpop.f32.mrf.mxu0 }
 0x1b8   : > { %1633 = vst.msk [vmem:[%s2659_s16 + $0x8] sm:$0xff] %vm750_vm2, %v1601_v52 }
 0x1b9   : > { %1185 = vrot.lane.b32.xlu2 %v1133_v53, %s2010_s19  ;;  %1461 = vrot.lane.b32.xlu0 %v1409_v54, %s2010_s19 }
 0x1bc   : > { %v1306_v54 = vpop.f32.mrf.mxu2 }
 0x1bf   : > { %v1141_v58 = vpop.f32.mrf.mxu1  ;;  %v879_v56 = vpop.f32.mrf.mxu0 }
 0x1c0   : > { %v1142_v59 = vadd.f32 %v2539_v21, %v1141_v58  ;;  %v1518_v58 = vld [vmem:[%s2641_s15 + $0x78] sm:$0xff] }
 0x1c1   : > { %1187 = vrot.lane.b32.xlu0 %v1136_v40, %s2010_s19  ;;  %v1307_v40 = vadd.f32 %v2539_v21, %v1306_v54 }
 0x1c2   : > { %v1448_v3 = vpop.permute.xlu2 %1447  ;;  %1191 = vrot.lane.b32.xlu2 %v1142_v59, %s2010_s19  ;;  %v1444_v24 = vpop.permute.xlu0 %1443  ;;  %v1514_v59 = vld [vmem:[%s2641_s15 + $0x58] sm:$0xff] }
 0x1c3   : > { %v1491_v41 = vsel %vm733_vm1, %v1298_v60, %v1448_v3  ;;  %v1489_v4 = vsel %vm733_vm1, %v1292_v37, %v1444_v24 }
 0x1c4   : > { %v1545_v7 = vsub.f32 %v1491_v41, %v1513_v61  ;;  %v1541_v1 = vsub.f32 %v1489_v4, %v1509_v8  ;;  %v1309_v35 = vpop.f32.mrf.mxu2 }
 0x1c5   : > { %v1411_v5 = vpop.f32.mrf.mxu3 }
 0x1c6   : > { %v1578_v43 = vmul.f32 %v2649_v42, %v1545_v7  ;;  %v1574_v11 = vmul.f32 %v2649_v42, %v1541_v1  ;;  %v1412_v15 = vadd.f32 %v2539_v21, %v1411_v5 }
 0x1c8   : > { %v1610_v12 = vadd.f32 %v1578_v43, %v1513_v61  ;;  %v1606_v13 = vadd.f32 %v1574_v11, %v1509_v8  ;;  %1463 = vrot.lane.b32.xlu1 %v1412_v15, %s2010_s19  ;;  %v1144_v57 = vpop.f32.mrf.mxu1  ;;  %v874_v43 = vadd.f32 %v2539_v21, %v873_v63  ;;  %v880_v11 = vadd.f32 %v2539_v21, %v879_v56  ;;  %v1519_v15 = vld [vmem:[%s2641_s15 + $0x80] sm:$0xff] }
 0x1c9   : > { %v1145_v22 = vadd.f32 %v2539_v21, %v1144_v57 }
 0x1ca   : > { %1642 = vst.msk [vmem:[%s2659_s16 + $0x50] sm:$0xff] %vm750_vm2, %v1610_v12  ;;  %v1174_v27 = vpop.permute.xlu2 %1173  ;;  %v1170_v28 = vpop.permute.xlu0 %1169  ;;  %v1515_v12 = vld [vmem:[%s2641_s15 + $0x60] sm:$0xff] }
 0x1cb   : > { %1638 = vst.msk [vmem:[%s2659_s16 + $0x30] sm:$0xff] %vm750_vm2, %v1606_v13  ;;  %v1216_v17 = vsel %vm733_vm1, %v871_v25, %v1174_v27  ;;  %v1214_v30 = vsel %vm733_vm1, %v865_v20, %v1170_v28  ;;  %v1446_v31 = vpop.permute.xlu1 %1445  ;;  %1193 = vrot.lane.b32.xlu0 %v1145_v22, %s2010_s19  ;;  %v882_v20 = vpop.f32.mrf.mxu0  ;;  %v1304_v28 = vadd.f32 %v2539_v21, %v1303_v33 }
 0x1cc   : > { %v1544_v34 = vsub.f32 %v1216_v17, %v1512_v50  ;;  %v1540_v62 = vsub.f32 %v1214_v30, %v1508_v23  ;;  %v1490_v29 = vsel %vm733_vm1, %v1295_v2, %v1446_v31  ;;  %v1517_v30 = vld [vmem:[%s2641_s15 + $0x70] sm:$0xff] }
 0x1cd   : > { %v1542_v18 = vsub.f32 %v1490_v29, %v1510_v0 }
 0x1ce   : > { %v1577_v39 = vmul.f32 %v2649_v42, %v1544_v34  ;;  %v1573_v6 = vmul.f32 %v2649_v42, %v1540_v62  ;;  %v1414_v19 = vpop.f32.mrf.mxu3 }
 0x1cf   : > { %v1575_v44 = vmul.f32 %v2649_v42, %v1542_v18  ;;  %v1415_v45 = vadd.f32 %v2539_v21, %v1414_v19 }
 0x1d0   : > { %v1609_v26 = vadd.f32 %v1577_v39, %v1512_v50  ;;  %v1605_v32 = vadd.f32 %v1573_v6, %v1508_v23  ;;  %1189 = vrot.lane.b32.xlu1 %v1139_v36, %s2010_s19  ;;  %v877_v39 = vadd.f32 %v2539_v21, %v876_v16  ;;  %v1516_v6 = vld [vmem:[%s2641_s15 + $0x68] sm:$0xff] }
 0x1d1   : > { %v1607_v46 = vadd.f32 %v1575_v44, %v1510_v0  ;;  %1465 = vrot.lane.b32.xlu2 %v1415_v45, %s2010_s19 }
 0x1d2   : > { %1641 = vst.msk [vmem:[%s2659_s16 + $0x48] sm:$0xff] %vm750_vm2, %v1609_v26 }
 0x1d3   : > { %1637 = vst.msk [vmem:[%s2659_s16 + $0x28] sm:$0xff] %vm750_vm2, %v1605_v32  ;;  %v1172_v48 = vpop.permute.xlu1 %1171  ;;  %v885_v62 = vpop.f32.mrf.mxu0 }
 0x1d4   : > { %1639 = vst.msk [vmem:[%s2659_s16 + $0x38] sm:$0xff] %vm750_vm2, %v1607_v46  ;;  %v1215_v14 = vsel %vm733_vm1, %v868_v47, %v1172_v48  ;;  %v1312_v32 = vpop.f32.mrf.mxu2  ;;  %v1310_v48 = vadd.f32 %v2539_v21, %v1309_v35 }
 0x1d5   : > { %v1543_v49 = vsub.f32 %v1215_v14, %v1511_v38  ;;  %v1521_v14 = vld [vmem:[%s2641_s15 + $0x90] sm:$0xff] }
 0x1d7   : > { %v1576_v51 = vmul.f32 %v2649_v42, %v1543_v49  ;;  %v1525_v49 = vld [vmem:[%s2641_s15 + $0xb0] sm:$0xff] }
 0x1d9   : > { %v1608_v52 = vadd.f32 %v1576_v51, %v1511_v38 }
 0x1db   : > { %1640 = vst.msk [vmem:[%s2659_s16 + $0x40] sm:$0xff] %vm750_vm2, %v1608_v52  ;;  %v888_v63 = vpop.f32.mrf.mxu0 }
 0x1dc   : > { %v1315_v38 = vpop.f32.mrf.mxu2 }
 0x1dd   : > { %v1417_v53 = vpop.f32.mrf.mxu3  ;;  %v1316_v33 = vadd.f32 %v2539_v21, %v1315_v38 }
 0x1de   : > { %v1418_v10 = vadd.f32 %v2539_v21, %v1417_v53 }
 0x1e0   : > { %1467 = vrot.lane.b32.xlu0 %v1418_v10, %s2010_s19 }
 0x1e3   : > { %v1454_v37 = vpop.permute.xlu2 %1453  ;;  %v1450_v60 = vpop.permute.xlu0 %1449 }
 0x1e4   : > { %v1494_v61 = vsel %vm733_vm1, %v1307_v40, %v1454_v37  ;;  %v1492_v8 = vsel %vm733_vm1, %v1301_v55, %v1450_v60  ;;  %v2784_v47 = vpop.f32.mrf.mxu0  ;;  %v1520_v60 = vld [vmem:[%s2641_s15 + $0x88] sm:$0xff] }
 0x1e5   : > { %v1550_v3 = vsub.f32 %v1494_v61, %v1518_v58  ;;  %v1546_v24 = vsub.f32 %v1492_v8, %v1514_v59  ;;  %v889_v61 = vadd.f32 %v2539_v21, %v888_v63  ;;  %v1313_v8 = vadd.f32 %v2539_v21, %v1312_v32  ;;  %v1530_v63 = vld [vmem:[%s2641_s15 + $0xd8] sm:$0xff] }
 0x1e6   : > { %v1420_v41 = vpop.f32.mrf.mxu3 }
 0x1e7   : > { %v1583_v4 = vmul.f32 %v2649_v42, %v1550_v3  ;;  %v1579_v7 = vmul.f32 %v2649_v42, %v1546_v24  ;;  %v1421_v1 = vadd.f32 %v2539_v21, %v1420_v41  ;;  %v1524_v3 = vld [vmem:[%s2641_s15 + $0xa8] sm:$0xff]  ;;  %v1522_v41 = vld [vmem:[%s2641_s15 + $0x98] sm:$0xff] }
 0x1e9   : > { %v1615_v5 = vadd.f32 %v1583_v4, %v1518_v58  ;;  %v1611_v9 = vadd.f32 %v1579_v7, %v1514_v59  ;;  %1469 = vrot.lane.b32.xlu1 %v1421_v1, %s2010_s19  ;;  %v883_v59 = vadd.f32 %v2539_v21, %v882_v20 }
 0x1eb   : > { %1647 = vst.msk [vmem:[%s2659_s16 + $0x78] sm:$0xff] %vm750_vm2, %v1615_v5  ;;  %v1180_v13 = vpop.permute.xlu2 %1179  ;;  %v1176_v57 = vpop.permute.xlu0 %1175 }
 0x1ec   : > { %1643 = vst.msk [vmem:[%s2659_s16 + $0x58] sm:$0xff] %vm750_vm2, %v1611_v9  ;;  %v1219_v25 = vsel %vm733_vm1, %v880_v11, %v1180_v13  ;;  %v1217_v22 = vsel %vm733_vm1, %v874_v43, %v1176_v57  ;;  %v2794_v40 = vpop.f32.mrf.mxu0  ;;  %v1318_v11 = vpop.f32.mrf.mxu2 }
 0x1ed   : > { %v1551_v50 = vsub.f32 %v1219_v25, %v1519_v15  ;;  %v1547_v23 = vsub.f32 %v1217_v22, %v1515_v12 }
 0x1ef   : > { %v1584_v2 = vmul.f32 %v2649_v42, %v1551_v50  ;;  %v1580_v27 = vmul.f32 %v2649_v42, %v1547_v23 }
 0x1f1   : > { %v1616_v0 = vadd.f32 %v1584_v2, %v1519_v15  ;;  %v1612_v17 = vadd.f32 %v1580_v27, %v1515_v12  ;;  %v886_v2 = vadd.f32 %v2539_v21, %v885_v62  ;;  %v1523_v27 = vld [vmem:[%s2641_s15 + $0xa0] sm:$0xff] }
 0x1f2   : > { %v1452_v31 = vpop.permute.xlu1 %1451 }
 0x1f3   : > { %1648 = vst.msk [vmem:[%s2659_s16 + $0x80] sm:$0xff] %vm750_vm2, %v1616_v0  ;;  %v1493_v34 = vsel %vm733_vm1, %v1304_v28, %v1452_v31 }
 0x1f4   : > { %1644 = vst.msk [vmem:[%s2659_s16 + $0x60] sm:$0xff] %vm750_vm2, %v1612_v17  ;;  %v1549_v29 = vsub.f32 %v1493_v34, %v1517_v30  ;;  %v897_v25 = vpop.f32.mrf.mxu0  ;;  %v1531_v17 = vld [vmem:[%s2641_s15 + $0xe0] sm:$0xff]  ;;  %v1321_v34 = vpop.f32.mrf.mxu2 }
 0x1f5   : > { %v898_v28 = vadd.f32 %v2539_v21, %v897_v25 }
 0x1f6   : > { %v1582_v18 = vmul.f32 %v2649_v42, %v1549_v29 }
 0x1f8   : > { %v1614_v36 = vadd.f32 %v1582_v18, %v1517_v30 }
 0x1fa   : > { %1646 = vst.msk [vmem:[%s2659_s16 + $0x70] sm:$0xff] %vm750_vm2, %v1614_v36  ;;  %v1178_v19 = vpop.permute.xlu1 %1177 }
 0x1fb   : > { %v1218_v44 = vsel %vm733_vm1, %v877_v39, %v1178_v19 }
 0x1fc   : > { %v1548_v45 = vsub.f32 %v1218_v44, %v1516_v6  ;;  %v1324_v19 = vpop.f32.mrf.mxu2  ;;  %v1319_v44 = vadd.f32 %v2539_v21, %v1318_v11 }
 0x1fe   : > { %v1581_v26 = vmul.f32 %v2649_v42, %v1548_v45  ;;  %v1325_v45 = vadd.f32 %v2539_v21, %v1324_v19 }
 0x200   : > { %v1613_v46 = vadd.f32 %v1581_v26, %v1516_v6  ;;  %v1526_v26 = vld [vmem:[%s2641_s15 + $0xb8] sm:$0xff] }
 0x202   : > { %1645 = vst.msk [vmem:[%s2659_s16 + $0x68] sm:$0xff] %vm750_vm2, %v1613_v46 }
 0x20a   : > { %v1456_v51 = vpop.permute.xlu0 %1455 }
 0x20b   : > { %v1460_v52 = vpop.permute.xlu2 %1459  ;;  %v1495_v16 = vsel %vm733_vm1, %v1310_v48, %v1456_v51 }
 0x20c   : > { %v1497_v53 = vsel %vm733_vm1, %v1316_v33, %v1460_v52  ;;  %v1553_v10 = vsub.f32 %v1495_v16, %v1521_v14 }
 0x20d   : > { %v1557_v54 = vsub.f32 %v1497_v53, %v1525_v49  ;;  %v892_v53 = vadd.f32 %v2539_v21, %v2784_v47 }
 0x20e   : > { %v1586_v55 = vmul.f32 %v2649_v42, %v1553_v10  ;;  %v1527_v10 = vld [vmem:[%s2641_s15 + $0xc0] sm:$0xff] }
 0x20f   : > { %v1590_v56 = vmul.f32 %v2649_v42, %v1557_v54 }
 0x210   : > { %v1618_v58 = vadd.f32 %v1586_v55, %v1521_v14 }
 0x211   : > { %v1622_v37 = vadd.f32 %v1590_v56, %v1525_v49 }
 0x212   : > { %1650 = vst.msk [vmem:[%s2659_s16 + $0x90] sm:$0xff] %vm750_vm2, %v1618_v58  ;;  %v1182_v24 = vpop.permute.xlu0 %1181 }
 0x213   : > { %1654 = vst.msk [vmem:[%s2659_s16 + $0xb0] sm:$0xff] %vm750_vm2, %v1622_v37  ;;  %v1186_v4 = vpop.permute.xlu2 %1185  ;;  %v1220_v7 = vsel %vm733_vm1, %v883_v59, %v1182_v24  ;;  %v1458_v1 = vpop.permute.xlu1 %1457  ;;  %v1322_v59 = vadd.f32 %v2539_v21, %v1321_v34  ;;  %v1534_v34 = vld [vmem:[%s2641_s15 + $0xf8] sm:$0xff] }
 0x214   : > { %v1222_v5 = vsel %vm733_vm1, %v889_v61, %v1186_v4  ;;  %v1552_v9 = vsub.f32 %v1220_v7, %v1520_v60  ;;  %v1496_v43 = vsel %vm733_vm1, %v1313_v8, %v1458_v1  ;;  %v900_v37 = vpop.f32.mrf.mxu0  ;;  %v1529_v61 = vld [vmem:[%s2641_s15 + $0xd0] sm:$0xff] }
 0x215   : > { %v1556_v15 = vsub.f32 %v1222_v5, %v1524_v3  ;;  %v1554_v12 = vsub.f32 %v1496_v43, %v1522_v41  ;;  %v895_v43 = vadd.f32 %v2539_v21, %v2794_v40  ;;  %v1327_v40 = vpop.f32.mrf.mxu2 }
 0x216   : > { %v1585_v13 = vmul.f32 %v2649_v42, %v1552_v9 }
 0x217   : > { %v1589_v57 = vmul.f32 %v2649_v42, %v1556_v15  ;;  %v1587_v20 = vmul.f32 %v2649_v42, %v1554_v12  ;;  %v1528_v15 = vld [vmem:[%s2641_s15 + $0xc8] sm:$0xff] }
 0x218   : > { %v1617_v22 = vadd.f32 %v1585_v13, %v1520_v60 }
 0x219   : > { %v1621_v50 = vadd.f32 %v1589_v57, %v1524_v3  ;;  %v1619_v23 = vadd.f32 %v1587_v20, %v1522_v41  ;;  %v901_v3 = vadd.f32 %v2539_v21, %v900_v37  ;;  %v1532_v41 = vld [vmem:[%s2641_s15 + $0xe8] sm:$0xff] }
 0x21a   : > { %1649 = vst.msk [vmem:[%s2659_s16 + $0x88] sm:$0xff] %vm750_vm2, %v1617_v22 }
 0x21b   : > { %1653 = vst.msk [vmem:[%s2659_s16 + $0xa8] sm:$0xff] %vm750_vm2, %v1621_v50  ;;  %v1184_v0 = vpop.permute.xlu1 %1183  ;;  %v1328_v50 = vadd.f32 %v2539_v21, %v1327_v40 }
 0x21c   : > { %1651 = vst.msk [vmem:[%s2659_s16 + $0x98] sm:$0xff] %vm750_vm2, %v1619_v23  ;;  %v1221_v30 = vsel %vm733_vm1, %v886_v2, %v1184_v0  ;;  %v1192_v31 = vpop.permute.xlu2 %1191  ;;  %v1533_v23 = vld [vmem:[%s2641_s15 + $0xf0] sm:$0xff] }
 0x21d   : > { %v1555_v62 = vsub.f32 %v1221_v30, %v1523_v27  ;;  %v1225_v29 = vsel %vm733_vm1, %v898_v28, %v1192_v31 }
 0x21e   : > { %v1563_v35 = vsub.f32 %v1225_v29, %v1531_v17 }
 0x21f   : > { %v1588_v18 = vmul.f32 %v2649_v42, %v1555_v62 }
 0x220   : > { %v1596_v36 = vmul.f32 %v2649_v42, %v1563_v35 }
 0x221   : > { %v1620_v39 = vadd.f32 %v1588_v18, %v1523_v27 }
 0x222   : > { %v1628_v6 = vadd.f32 %v1596_v36, %v1531_v17  ;;  %v1330_v17 = vpop.f32.mrf.mxu2 }
 0x223   : > { %1652 = vst.msk [vmem:[%s2659_s16 + $0xa0] sm:$0xff] %vm750_vm2, %v1620_v39  ;;  %v1331_v31 = vadd.f32 %v2539_v21, %v1330_v17 }
 0x224   : > { %1660 = vst.msk [vmem:[%s2659_s16 + $0xe0] sm:$0xff] %vm750_vm2, %v1628_v6 }
 0x22b   : > { %v1466_v32 = vpop.permute.xlu2 %1465  ;;  %v1462_v46 = vpop.permute.xlu0 %1461 }
 0x22c   : > { %v1500_v38 = vsel %vm733_vm1, %v1325_v45, %v1466_v32  ;;  %v1498_v48 = vsel %vm733_vm1, %v1319_v44, %v1462_v46 }
 0x22d   : > { %v1562_v14 = vsub.f32 %v1500_v38, %v1530_v63  ;;  %v1558_v33 = vsub.f32 %v1498_v48, %v1526_v26 }
 0x22f   : > { %v1595_v49 = vmul.f32 %v2649_v42, %v1562_v14  ;;  %v1591_v51 = vmul.f32 %v2649_v42, %v1558_v33 }
 0x231   : > { %v1627_v52 = vadd.f32 %v1595_v49, %v1530_v63  ;;  %v1623_v16 = vadd.f32 %v1591_v51, %v1526_v26 }
 0x233   : > { %1659 = vst.msk [vmem:[%s2659_s16 + $0xd8] sm:$0xff] %vm750_vm2, %v1627_v52  ;;  %v1188_v54 = vpop.permute.xlu0 %1187 }
 0x234   : > { %1655 = vst.msk [vmem:[%s2659_s16 + $0xb8] sm:$0xff] %vm750_vm2, %v1623_v16  ;;  %v1223_v55 = vsel %vm733_vm1, %v892_v53, %v1188_v54 }
 0x235   : > { %v1559_v56 = vsub.f32 %v1223_v55, %v1527_v10 }
 0x237   : > { %v1592_v58 = vmul.f32 %v2649_v42, %v1559_v56 }
 0x239   : > { %v1624_v60 = vadd.f32 %v1592_v58, %v1527_v10 }
 0x23a   : > { %v1464_v47 = vpop.permute.xlu1 %1463 }
 0x23b   : > { %1656 = vst.msk [vmem:[%s2659_s16 + $0xc0] sm:$0xff] %vm750_vm2, %v1624_v60  ;;  %v1499_v8 = vsel %vm733_vm1, %v1322_v59, %v1464_v47 }
 0x23c   : > { %v1561_v24 = vsub.f32 %v1499_v8, %v1529_v61 }
 0x23d   : > { %v1194_v4 = vpop.permute.xlu0 %1193 }
 0x23e   : > { %v1594_v7 = vmul.f32 %v2649_v42, %v1561_v24  ;;  %v1226_v1 = vsel %vm733_vm1, %v901_v3, %v1194_v4 }
 0x23f   : > { %v1564_v5 = vsub.f32 %v1226_v1, %v1532_v41 }
 0x240   : > { %v1626_v9 = vadd.f32 %v1594_v7, %v1529_v61 }
 0x241   : > { %v1597_v11 = vmul.f32 %v2649_v42, %v1564_v5 }
 0x242   : > { %1658 = vst.msk [vmem:[%s2659_s16 + $0xd0] sm:$0xff] %vm750_vm2, %v1626_v9  ;;  %v1190_v12 = vpop.permute.xlu1 %1189 }
 0x243   : > { %v1629_v13 = vadd.f32 %v1597_v11, %v1532_v41  ;;  %v1224_v57 = vsel %vm733_vm1, %v895_v43, %v1190_v12 }
 0x244   : > { %v1560_v20 = vsub.f32 %v1224_v57, %v1528_v15 }
 0x245   : > { %1661 = vst.msk [vmem:[%s2659_s16 + $0xe8] sm:$0xff] %vm750_vm2, %v1629_v13 }
 0x246   : > { %v1593_v25 = vmul.f32 %v2649_v42, %v1560_v20 }
 0x248   : > { %v1625_v22 = vadd.f32 %v1593_v25, %v1528_v15 }
 0x24a   : > { %1657 = vst.msk [vmem:[%s2659_s16 + $0xc8] sm:$0xff] %vm750_vm2, %v1625_v22 }
 0x252   : > { %v1468_v2 = vpop.permute.xlu0 %1467 }
 0x253   : > { %v1501_v27 = vsel %vm733_vm1, %v1328_v50, %v1468_v2 }
 0x254   : > { %v1565_v28 = vsub.f32 %v1501_v27, %v1533_v23 }
 0x256   : > { %v1598_v0 = vmul.f32 %v2649_v42, %v1565_v28 }
 0x258   : > { %v1630_v30 = vadd.f32 %v1598_v0, %v1533_v23 }
 0x25a   : > { %1662 = vst.msk [vmem:[%s2659_s16 + $0xf0] sm:$0xff] %vm750_vm2, %v1630_v30 }
 0x25b   : > { %v1470_v62 = vpop.permute.xlu1 %1469 }
 0x25c   : > { %v1502_v29 = vsel %vm733_vm1, %v1331_v31, %v1470_v62 }
 0x25d   : > { %v1566_v35 = vsub.f32 %v1502_v29, %v1534_v34 }
 0x25f   : > { %v1599_v18 = vmul.f32 %v2649_v42, %v1566_v35 }
 0x261   : > { %v1631_v36 = vadd.f32 %v1599_v18, %v1534_v34 }
 0x263   : > { %1663 = vst.msk [vmem:[%s2659_s16 + $0xf8] sm:$0xff] %vm750_vm2, %v1631_v36 }
 0x264 PF: > { %s18_s30 = sadd.s32 1, %s2007_s30   ;;  %s2903_s26 = smov %s1999_s28 }
 0x265   : > { %p15_p10 = scmp.ge.s32.totalorder %s18_s30, 6   ;;  %s2904_s27 = smov %s2003_s29 }
 0x266   : > { %s2905_s28 = smov %s2908_s6  ;;  %s2906_s29 = smov %s2912_s8 }
 0x267   :  { %17 = sbr.rel (!%p15_p10) target bundleno = 3 (0x3), region = 90 }

</bundles_post_ra>
